<compile_context>
chip_gen: v7x
topology: tpu7x:2x2x1
jax: 0.10.0
libtpu: 0.0.40
codegen_flags: <defaults>
</compile_context>

<pallas_src>
import jax
import jax.numpy as jnp
from jax import lax
from jax.experimental import pallas as pl
from jax.experimental.pallas import tpu as pltpu

INPUT_SIZE = 2      # data_train_sorted has 2 columns
HIDDEN_SIZE = 64
OUTPUT_SIZE = 2
NUM_LAYERS = 2      # hard-wired as two explicit layers inside the kernel

_IP = 8             # input features padded 2 -> 8 (column INPUT_SIZE carries a constant 1.0)
_MAX_T_BLK = 16     # timesteps per grid step (inner loop fully unrolled)
_MAX_B_TILE = 128   # batch rows per tile (MXU row utilization lever)


def _round_up(x, m):
    return ((x + m - 1) // m) * m


def _make_kernel(T_total, T_BLK, B_TILE):
    """Build the kernel closure for static (T_total, T_BLK, B_TILE)."""
    H = HIDDEN_SIZE
    G = 4 * H
    needs_mask = (T_total % T_BLK) != 0   # only the last time block can contain padded steps

    def kernel(x_ref,      # (T_BLK, B_TILE, _IP)  raw inputs, col INPUT_SIZE == 1.0
               wih0_ref,   # (_IP, 4H)   W_ih0^T rows 0..1, row 2 = (b_ih0 + b_hh0), rest zero
               whh0_ref,   # (H, 4H)     W_hh0^T
               w1a_ref,    # (H, 4H)     W_ih1^T  (acts on h0)
               w1b_ref,    # (H, 4H)     W_hh1^T  (acts on h1)
               b1_ref,     # (1, 4H)     b_ih1 + b_hh1
               wfc_ref,    # (H, O)      fc weight^T
               bfc_ref,    # (1, O)
               out_ref,    # (B_TILE, O)
               h0_ref, c0_ref, h1_ref, c1_ref):   # VMEM scratch, carried across time blocks
        t_blk = pl.program_id(1)
        nt = pl.num_programs(1)
        t0 = t_blk * T_BLK

        @pl.when(t_blk == 0)
        def _():
            z = jnp.zeros((B_TILE, H), jnp.float32)
            h0_ref[...] = z
            c0_ref[...] = z
            h1_ref[...] = z
            c1_ref[...] = z

        b1 = b1_ref[...]                                   # (1, 4H), broadcast at the add

        def gates(g):
            # gate layout (i, f, o, g): one contiguous sigmoid slab + one tanh slab.
            s = jax.nn.sigmoid(g[:, 0:3 * H])
            return s[:, 0:H], s[:, H:2 * H], s[:, 2 * H:3 * H], jnp.tanh(g[:, 3 * H:4 * H])

        def cell0(xt, h, c):
            # Weight refs indexed here (inside the loop) so vreg live ranges stay short;
            # layer-0 bias comes in through the constant-1 input column.
            g = (jnp.dot(xt, wih0_ref[...], preferred_element_type=jnp.float32)
                 + jnp.dot(h, whh0_ref[...], preferred_element_type=jnp.float32))
            i, f, o, cand = gates(g)
            c2 = f * c + i * cand
            return o * jnp.tanh(c2), c2

        def cell1(h_below, h, c):
            g = (jnp.dot(h_below, w1a_ref[...], preferred_element_type=jnp.float32)
                 + jnp.dot(h, w1b_ref[...], preferred_element_type=jnp.float32)
                 + b1)
            i, f, o, cand = gates(g)
            c2 = f * c + i * cand
            return o * jnp.tanh(c2), c2

        h0 = h0_ref[...]
        c0 = c0_ref[...]
        h1 = h1_ref[...]
        c1 = c1_ref[...]

        # ---- wavefront over the two layers within this time block ----
        # prologue: layer-0 at local step 0
        h0n, c0n = cell0(x_ref[0], h0, c0)
        if needs_mask:
            m = (t0 < T_total).astype(jnp.float32)
            h0n = m * h0n + (1.0 - m) * h0
            c0n = m * c0n + (1.0 - m) * c0
        carry = (h0n, c0n, h1, c1)

        def step(t, carry):
            h0, c0, h1, c1 = carry
            # layer-1 at local step t-1 (uses the carried h0) and layer-0 at local step t:
            # independent chains -> their matmuls overlap on the MXU.
            h1n, c1n = cell1(h0, h1, c1)
            h0n, c0n = cell0(x_ref[t], h0, c0)
            if needs_mask:
                gt = t0 + t
                m0 = (gt < T_total).astype(jnp.float32)        # layer-0 computes step gt
                m1 = (gt - 1 < T_total).astype(jnp.float32)    # layer-1 computes step gt-1
                h0n = m0 * h0n + (1.0 - m0) * h0
                c0n = m0 * c0n + (1.0 - m0) * c0
                h1n = m1 * h1n + (1.0 - m1) * h1
                c1n = m1 * c1n + (1.0 - m1) * c1
            return (h0n, c0n, h1n, c1n)

        h0, c0, h1, c1 = lax.fori_loop(1, T_BLK, step, carry, unroll=True)

        # epilogue: layer-1 at local step T_BLK - 1
        h1n, c1n = cell1(h0, h1, c1)
        if needs_mask:
            m = ((t0 + T_BLK - 1) < T_total).astype(jnp.float32)
            h1n = m * h1n + (1.0 - m) * h1
            c1n = m * c1n + (1.0 - m) * c1
        h1, c1 = h1n, c1n

        h0_ref[...] = h0
        c0_ref[...] = c0
        h1_ref[...] = h1
        c1_ref[...] = c1

        @pl.when(t_blk == nt - 1)
        def _():
            out_ref[...] = (jnp.dot(h1, wfc_ref[...], preferred_element_type=jnp.float32)
                            + bfc_ref[...])

    return kernel


def lstm_pendulum_forward(x_btf, params):
    """x_btf: (B, T, input_size) float32, batch_first like PyTorch. Returns (B, output_size)."""
    B, T, I = x_btf.shape
    H, O = HIDDEN_SIZE, OUTPUT_SIZE
    G = 4 * H
    assert I == INPUT_SIZE

    # --- reorder gate rows (i, f, g, o) -> (i, f, o, g) along the 4H axis (PyTorch row layout) ---
    def reorder(w):
        return jnp.concatenate([w[0:H], w[H:2 * H], w[3 * H:4 * H], w[2 * H:3 * H]], axis=0)

    b0 = reorder(params["b_ih0"] + params["b_hh0"])                   # (4H,)
    # layer-0 input weights with the bias folded in as row `I` (x gets a constant-1 feature there)
    wih0_t = jnp.zeros((_IP, G), jnp.float32)
    wih0_t = wih0_t.at[:I].set(reorder(params["w_ih0"]).T)            # (I, 4H)
    wih0_t = wih0_t.at[I].set(b0)
    whh0_t = reorder(params["w_hh0"]).T                               # (H, 4H)
    w1a = reorder(params["w_ih1"]).T                                  # (H, 4H) acts on h0
    w1b = reorder(params["w_hh1"]).T                                  # (H, 4H) acts on h1
    b1 = reorder(params["b_ih1"] + params["b_hh1"]).reshape(1, G)
    wfc = params["w_fc"].T                                            # (H, O)
    bfc = params["b_fc"].reshape(1, O)

    # --- tiling choices ---
    B_TILE = min(_MAX_B_TILE, _round_up(B, 8))
    B_pad = _round_up(B, B_TILE)
    nb = B_pad // B_TILE
    T_BLK = min(_MAX_T_BLK, T)
    T_pad = _round_up(T, T_BLK)
    nt = T_pad // T_BLK

    # --- time-major input, padded to (T_pad, B_pad, _IP); column I carries the constant 1.0 ---
    x = jnp.transpose(x_btf.astype(jnp.float32), (1, 0, 2))           # (T, B, I)
    x = jnp.pad(x, ((0, T_pad - T), (0, B_pad - B), (0, _IP - I)))
    x = x.at[:, :, I].set(1.0)

    kernel = _make_kernel(T, T_BLK, B_TILE)

    grid_spec = pltpu.PrefetchScalarGridSpec(
        num_scalar_prefetch=0,
        grid=(nb, nt),                                                # batch tiles, time blocks
        in_specs=[
            pl.BlockSpec((T_BLK, B_TILE, _IP), lambda b, t: (t, b, 0)),   # streamed x blocks
            pl.BlockSpec((_IP, G), lambda b, t: (0, 0)),                  # wih0 (+ folded bias)
            pl.BlockSpec((H, G), lambda b, t: (0, 0)),                    # whh0
            pl.BlockSpec((H, G), lambda b, t: (0, 0)),                    # w1a
            pl.BlockSpec((H, G), lambda b, t: (0, 0)),                    # w1b
            pl.BlockSpec((1, G), lambda b, t: (0, 0)),                    # b1
            pl.BlockSpec((H, O), lambda b, t: (0, 0)),                    # wfc
            pl.BlockSpec((1, O), lambda b, t: (0, 0)),                    # bfc
        ],
        out_specs=pl.BlockSpec((B_TILE, O), lambda b, t: (b, 0)),
        scratch_shapes=[pltpu.VMEM((B_TILE, H), jnp.float32) for _ in range(4)],
    )

    out = pl.pallas_call(
        kernel,
        out_shape=jax.ShapeDtypeStruct((B_pad, O), jnp.float32),
        grid_spec=grid_spec,
        compiler_params=pltpu.CompilerParams(
            dimension_semantics=("parallel", "arbitrary"),   # batch tiles may split across TCs (v7x)
            vmem_limit_bytes=32 * 1024 * 1024,               # explicit, safe on v5e/v6e/v7x
        ),
    )(x, wih0_t, whh0_t, w1a, w1b, b1, wfc, bfc)
    return out[:B]


def _init_params(key):
    """Deterministic init mirroring PyTorch nn.LSTM / nn.Linear shapes (uniform(-1/sqrt(H), 1/sqrt(H)))."""
    H, I, O = HIDDEN_SIZE, INPUT_SIZE, OUTPUT_SIZE
    k = 1.0 / jnp.sqrt(jnp.float32(H))
    names_shapes = [
        ("w_ih0", (4 * H, I)), ("w_hh0", (4 * H, H)), ("b_ih0", (4 * H,)), ("b_hh0", (4 * H,)),
        ("w_ih1", (4 * H, H)), ("w_hh1", (4 * H, H)), ("b_ih1", (4 * H,)), ("b_hh1", (4 * H,)),
        ("w_fc", (O, H)), ("b_fc", (O,)),
    ]
    params = {}
    keys = jax.random.split(key, len(names_shapes))
    for (name, shape), kk in zip(names_shapes, keys):
        params[name] = jax.random.uniform(kk, shape, jnp.float32, -k, k)
    return params


def _reference_forward(x_btf, params):
    """Pure-JAX reference (same math as PyTorch nn.LSTM forward, gate order i,f,g,o)."""
    H = HIDDEN_SIZE
    B, T, _ = x_btf.shape
    h0 = jnp.zeros((B, H), jnp.float32)
    c0 = jnp.zeros((B, H), jnp.float32)
    h1 = jnp.zeros((B, H), jnp.float32)
    c1 = jnp.zeros((B, H), jnp.float32)

    def cell(xt, h, c, w_ih, w_hh, b_ih, b_hh):
        g = xt @ w_ih.T + h @ w_hh.T + b_ih + b_hh
        i = jax.nn.sigmoid(g[:, 0:H])
        f = jax.nn.sigmoid(g[:, H:2 * H])
        gg = jnp.tanh(g[:, 2 * H:3 * H])
        o = jax.nn.sigmoid(g[:, 3 * H:4 * H])
        c_new = f * c + i * gg
        h_new = o * jnp.tanh(c_new)
        return h_new, c_new

    for t in range(T):
        xt = x_btf[:, t, :]
        h0, c0 = cell(xt, h0, c0, params["w_ih0"], params["w_hh0"], params["b_ih0"], params["b_hh0"])
        h1, c1 = cell(h0, h1, c1, params["w_ih1"], params["w_hh1"], params["b_ih1"], params["b_hh1"])
    return h1 @ params["w_fc"].T + params["b_fc"]


if __name__ == "__main__":
    key = jax.random.PRNGKey(0)
    k_param, k_x1, k_x2 = jax.random.split(key, 3)

    params = _init_params(k_param)

    # case 1: small shapes matching the module spec (single time block, single batch tile)
    B1, T1 = 2, 8
    x1 = jax.random.normal(k_x1, (B1, T1, INPUT_SIZE), jnp.float32)
    out1 = jax.block_until_ready(lstm_pendulum_forward(x1, params))
    ref1 = _reference_forward(x1, params)
    assert out1.shape == (B1, OUTPUT_SIZE)
    assert jnp.allclose(out1, ref1, atol=1e-4, rtol=1e-4), (out1, ref1)

    # case 2: multiple time blocks + ragged T (exercises cross-block state carry and tail masking)
    B2, T2 = 3, 35
    x2 = jax.random.normal(k_x2, (B2, T2, INPUT_SIZE), jnp.float32)
    out2 = jax.block_until_ready(lstm_pendulum_forward(x2, params))
    ref2 = _reference_forward(x2, params)
    assert out2.shape == (B2, OUTPUT_SIZE)
    assert jnp.allclose(out2, ref2, atol=1e-4, rtol=1e-4), (out2, ref2)

    print("KERNEL_OK")
</pallas_src>

<mosaic_0001>
module attributes {stable_mosaic.version = 11 : i64} {
  func.func @kernel(%arg0: i32, %arg1: i32, %arg2: memref<8x8x8xf32, #tpu.memory_space<vmem>>, %arg3: memref<8x256xf32, #tpu.memory_space<vmem>>, %arg4: memref<64x256xf32, #tpu.memory_space<vmem>>, %arg5: memref<64x256xf32, #tpu.memory_space<vmem>>, %arg6: memref<64x256xf32, #tpu.memory_space<vmem>>, %arg7: memref<1x256xf32, #tpu.memory_space<vmem>>, %arg8: memref<64x2xf32, #tpu.memory_space<vmem>>, %arg9: memref<1x2xf32, #tpu.memory_space<vmem>>, %arg10: memref<8x2xf32, #tpu.memory_space<vmem>>, %arg11: memref<8x64xf32, #tpu.memory_space<vmem>>, %arg12: memref<8x64xf32, #tpu.memory_space<vmem>>, %arg13: memref<8x64xf32, #tpu.memory_space<vmem>>, %arg14: memref<8x64xf32, #tpu.memory_space<vmem>>) attributes {dimension_semantics = [#tpu.dimension_semantics<parallel>, #tpu.dimension_semantics<arbitrary>], iteration_bounds = array<i64: 1, 1>, scalar_prefetch = 0 : i64, scratch_operands = 4 : i64, tpu.core_type = #tpu.core_type<tc>, window_params = [{transform_indices = @transform_0, window_bounds = array<i64: 8, 8, 8>}, {pipeline_mode = #tpu.pipeline_mode<synchronous>, transform_indices = @transform_1, window_bounds = array<i64: 8, 256>}, {pipeline_mode = #tpu.pipeline_mode<synchronous>, transform_indices = @transform_2, window_bounds = array<i64: 64, 256>}, {pipeline_mode = #tpu.pipeline_mode<synchronous>, transform_indices = @transform_3, window_bounds = array<i64: 64, 256>}, {pipeline_mode = #tpu.pipeline_mode<synchronous>, transform_indices = @transform_4, window_bounds = array<i64: 64, 256>}, {pipeline_mode = #tpu.pipeline_mode<synchronous>, transform_indices = @transform_5, window_bounds = array<i64: 1, 256>}, {pipeline_mode = #tpu.pipeline_mode<synchronous>, transform_indices = @transform_6, window_bounds = array<i64: 64, 2>}, {pipeline_mode = #tpu.pipeline_mode<synchronous>, transform_indices = @transform_7, window_bounds = array<i64: 1, 2>}, {transform_indices = @transform_8, window_bounds = array<i64: 8, 2>}]} {
    %c0_i32 = arith.constant 0 : i32
    %0 = arith.cmpi eq, %arg1, %c0_i32 : i32
    %1 = arith.extui %0 : i1 to i32
    %c0_i32_0 = arith.constant 0 : i32
    %2 = arith.cmpi ne, %1, %c0_i32_0 : i32
    scf.if %2 {
      %cst_149 = arith.constant 0.000000e+00 : f32
      %390 = vector.broadcast %cst_149 : f32 to vector<8x64xf32>
      %c0_150 = arith.constant 0 : index
      %c0_151 = arith.constant 0 : index
      %391 = vector.load %arg11[%c0_150, %c0_151] : memref<8x64xf32, #tpu.memory_space<vmem>>, vector<8x64xf32>
      tpu.vector_store %arg11[%c0_150, %c0_151], %390 {strides = array<i32>} : memref<8x64xf32, #tpu.memory_space<vmem>>, vector<8x64xf32>,
      %c0_152 = arith.constant 0 : index
      %c0_153 = arith.constant 0 : index
      %392 = vector.load %arg12[%c0_152, %c0_153] : memref<8x64xf32, #tpu.memory_space<vmem>>, vector<8x64xf32>
      tpu.vector_store %arg12[%c0_152, %c0_153], %390 {strides = array<i32>} : memref<8x64xf32, #tpu.memory_space<vmem>>, vector<8x64xf32>,
      %c0_154 = arith.constant 0 : index
      %c0_155 = arith.constant 0 : index
      %393 = vector.load %arg13[%c0_154, %c0_155] : memref<8x64xf32, #tpu.memory_space<vmem>>, vector<8x64xf32>
      tpu.vector_store %arg13[%c0_154, %c0_155], %390 {strides = array<i32>} : memref<8x64xf32, #tpu.memory_space<vmem>>, vector<8x64xf32>,
      %c0_156 = arith.constant 0 : index
      %c0_157 = arith.constant 0 : index
      %394 = vector.load %arg14[%c0_156, %c0_157] : memref<8x64xf32, #tpu.memory_space<vmem>>, vector<8x64xf32>
      tpu.vector_store %arg14[%c0_156, %c0_157], %390 {strides = array<i32>} : memref<8x64xf32, #tpu.memory_space<vmem>>, vector<8x64xf32>,
    } else {
    }
    %c0 = arith.constant 0 : index
    %c0_1 = arith.constant 0 : index
    %3 = vector.load %arg7[%c0, %c0_1] : memref<1x256xf32, #tpu.memory_space<vmem>>, vector<1x256xf32>
    %c0_2 = arith.constant 0 : index
    %c0_3 = arith.constant 0 : index
    %4 = vector.load %arg11[%c0_2, %c0_3] : memref<8x64xf32, #tpu.memory_space<vmem>>, vector<8x64xf32>
    %c0_4 = arith.constant 0 : index
    %c0_5 = arith.constant 0 : index
    %5 = vector.load %arg12[%c0_4, %c0_5] : memref<8x64xf32, #tpu.memory_space<vmem>>, vector<8x64xf32>
    %c0_6 = arith.constant 0 : index
    %c0_7 = arith.constant 0 : index
    %6 = vector.load %arg13[%c0_6, %c0_7] : memref<8x64xf32, #tpu.memory_space<vmem>>, vector<8x64xf32>
    %c0_8 = arith.constant 0 : index
    %c0_9 = arith.constant 0 : index
    %7 = vector.load %arg14[%c0_8, %c0_9] : memref<8x64xf32, #tpu.memory_space<vmem>>, vector<8x64xf32>
    %c0_10 = arith.constant 0 : index
    %c0_11 = arith.constant 0 : index
    %c0_12 = arith.constant 0 : index
    %8 = vector.load %arg2[%c0_10, %c0_11, %c0_12] : memref<8x8x8xf32, #tpu.memory_space<vmem>>, vector<1x8x8xf32>
    %9 = vector.shape_cast %8 : vector<1x8x8xf32> to vector<8x8xf32>
    %c0_13 = arith.constant 0 : index
    %c0_14 = arith.constant 0 : index
    %10 = vector.load %arg3[%c0_13, %c0_14] : memref<8x256xf32, #tpu.memory_space<vmem>>, vector<8x256xf32>
    %cst = arith.constant dense<0.000000e+00> : vector<8x256xf32>
    %11 = tpu.matmul %9, %10, %cst {dimension_numbers = #tpu.dot_dimension_numbers<[1], [0], [0], [1], [0, 0, 1, 1], [], []>} : vector<8x8xf32>, vector<8x256xf32>, vector<8x256xf32> -> vector<8x256xf32>
    %c0_15 = arith.constant 0 : index
    %c0_16 = arith.constant 0 : index
    %12 = vector.load %arg4[%c0_15, %c0_16] : memref<64x256xf32, #tpu.memory_space<vmem>>, vector<64x256xf32>
    %cst_17 = arith.constant dense<0.000000e+00> : vector<8x256xf32>
    %13 = tpu.matmul %4, %12, %cst_17 {dimension_numbers = #tpu.dot_dimension_numbers<[1], [0], [0], [1], [0, 0, 1, 1], [], []>} : vector<8x64xf32>, vector<64x256xf32>, vector<8x256xf32> -> vector<8x256xf32>
    %14 = arith.addf %11, %13 : vector<8x256xf32>
    %15 = vector.extract_strided_slice %14 {offsets = [0, 0], sizes = [8, 192], strides = [1, 1]} : vector<8x256xf32> to vector<8x192xf32>
    %16 = arith.negf %15 : vector<8x192xf32>
    %17 = math.exp %16 : vector<8x192xf32>
    %cst_18 = arith.constant 1.000000e+00 : f32
    %18 = vector.broadcast %cst_18 : f32 to vector<8x192xf32>
    %19 = arith.addf %18, %17 : vector<8x192xf32>
    %20 = arith.divf %18, %19 : vector<8x192xf32>
    %21 = vector.extract_strided_slice %20 {offsets = [0, 0], sizes = [8, 64], strides = [1, 1]} : vector<8x192xf32> to vector<8x64xf32>
    %22 = vector.extract_strided_slice %20 {offsets = [0, 64], sizes = [8, 64], strides = [1, 1]} : vector<8x192xf32> to vector<8x64xf32>
    %23 = vector.extract_strided_slice %20 {offsets = [0, 128], sizes = [8, 64], strides = [1, 1]} : vector<8x192xf32> to vector<8x64xf32>
    %24 = vector.extract_strided_slice %14 {offsets = [0, 192], sizes = [8, 64], strides = [1, 1]} : vector<8x256xf32> to vector<8x64xf32>
    %25 = math.tanh %24 : vector<8x64xf32>
    %26 = arith.mulf %22, %5 : vector<8x64xf32>
    %27 = arith.mulf %21, %25 : vector<8x64xf32>
    %28 = arith.addf %26, %27 : vector<8x64xf32>
    %29 = math.tanh %28 : vector<8x64xf32>
    %30 = arith.mulf %23, %29 : vector<8x64xf32>
    %c1_i32 = arith.constant 1 : i32
    %c0_19 = arith.constant 0 : index
    %c0_20 = arith.constant 0 : index
    %31 = vector.load %arg5[%c0_19, %c0_20] : memref<64x256xf32, #tpu.memory_space<vmem>>, vector<64x256xf32>
    %cst_21 = arith.constant dense<0.000000e+00> : vector<8x256xf32>
    %32 = tpu.matmul %30, %31, %cst_21 {dimension_numbers = #tpu.dot_dimension_numbers<[1], [0], [0], [1], [0, 0, 1, 1], [], []>} : vector<8x64xf32>, vector<64x256xf32>, vector<8x256xf32> -> vector<8x256xf32>
    %c0_22 = arith.constant 0 : index
    %c0_23 = arith.constant 0 : index
    %33 = vector.load %arg6[%c0_22, %c0_23] : memref<64x256xf32, #tpu.memory_space<vmem>>, vector<64x256xf32>
    %cst_24 = arith.constant dense<0.000000e+00> : vector<8x256xf32>
    %34 = tpu.matmul %6, %33, %cst_24 {dimension_numbers = #tpu.dot_dimension_numbers<[1], [0], [0], [1], [0, 0, 1, 1], [], []>} : vector<8x64xf32>, vector<64x256xf32>, vector<8x256xf32> -> vector<8x256xf32>
    %35 = arith.addf %32, %34 : vector<8x256xf32>
    %36 = vector.broadcast %3 : vector<1x256xf32> to vector<8x256xf32>
    %37 = arith.addf %35, %36 : vector<8x256xf32>
    %38 = vector.extract_strided_slice %37 {offsets = [0, 0], sizes = [8, 192], strides = [1, 1]} : vector<8x256xf32> to vector<8x192xf32>
    %39 = arith.negf %38 : vector<8x192xf32>
    %40 = math.exp %39 : vector<8x192xf32>
    %cst_25 = arith.constant 1.000000e+00 : f32
    %41 = vector.broadcast %cst_25 : f32 to vector<8x192xf32>
    %42 = arith.addf %41, %40 : vector<8x192xf32>
    %43 = arith.divf %41, %42 : vector<8x192xf32>
    %44 = vector.extract_strided_slice %43 {offsets = [0, 0], sizes = [8, 64], strides = [1, 1]} : vector<8x192xf32> to vector<8x64xf32>
    %45 = vector.extract_strided_slice %43 {offsets = [0, 64], sizes = [8, 64], strides = [1, 1]} : vector<8x192xf32> to vector<8x64xf32>
    %46 = vector.extract_strided_slice %43 {offsets = [0, 128], sizes = [8, 64], strides = [1, 1]} : vector<8x192xf32> to vector<8x64xf32>
    %47 = vector.extract_strided_slice %37 {offsets = [0, 192], sizes = [8, 64], strides = [1, 1]} : vector<8x256xf32> to vector<8x64xf32>
    %48 = math.tanh %47 : vector<8x64xf32>
    %49 = arith.mulf %45, %7 : vector<8x64xf32>
    %50 = arith.mulf %44, %48 : vector<8x64xf32>
    %51 = arith.addf %49, %50 : vector<8x64xf32>
    %52 = math.tanh %51 : vector<8x64xf32>
    %53 = arith.mulf %46, %52 : vector<8x64xf32>
    %54 = arith.index_cast %c1_i32 : i32 to index
    %c0_26 = arith.constant 0 : index
    %c0_27 = arith.constant 0 : index
    %55 = vector.load %arg2[%54, %c0_26, %c0_27] : memref<8x8x8xf32, #tpu.memory_space<vmem>>, vector<1x8x8xf32>
    %56 = vector.shape_cast %55 : vector<1x8x8xf32> to vector<8x8xf32>
    %c0_28 = arith.constant 0 : index
    %c0_29 = arith.constant 0 : index
    %57 = vector.load %arg3[%c0_28, %c0_29] : memref<8x256xf32, #tpu.memory_space<vmem>>, vector<8x256xf32>
    %cst_30 = arith.constant dense<0.000000e+00> : vector<8x256xf32>
    %58 = tpu.matmul %56, %57, %cst_30 {dimension_numbers = #tpu.dot_dimension_numbers<[1], [0], [0], [1], [0, 0, 1, 1], [], []>} : vector<8x8xf32>, vector<8x256xf32>, vector<8x256xf32> -> vector<8x256xf32>
    %c0_31 = arith.constant 0 : index
    %c0_32 = arith.constant 0 : index
    %59 = vector.load %arg4[%c0_31, %c0_32] : memref<64x256xf32, #tpu.memory_space<vmem>>, vector<64x256xf32>
    %cst_33 = arith.constant dense<0.000000e+00> : vector<8x256xf32>
    %60 = tpu.matmul %30, %59, %cst_33 {dimension_numbers = #tpu.dot_dimension_numbers<[1], [0], [0], [1], [0, 0, 1, 1], [], []>} : vector<8x64xf32>, vector<64x256xf32>, vector<8x256xf32> -> vector<8x256xf32>
    %61 = arith.addf %58, %60 : vector<8x256xf32>
    %62 = vector.extract_strided_slice %61 {offsets = [0, 0], sizes = [8, 192], strides = [1, 1]} : vector<8x256xf32> to vector<8x192xf32>
    %63 = arith.negf %62 : vector<8x192xf32>
    %64 = math.exp %63 : vector<8x192xf32>
    %cst_34 = arith.constant 1.000000e+00 : f32
    %65 = vector.broadcast %cst_34 : f32 to vector<8x192xf32>
    %66 = arith.addf %65, %64 : vector<8x192xf32>
    %67 = arith.divf %65, %66 : vector<8x192xf32>
    %68 = vector.extract_strided_slice %67 {offsets = [0, 0], sizes = [8, 64], strides = [1, 1]} : vector<8x192xf32> to vector<8x64xf32>
    %69 = vector.extract_strided_slice %67 {offsets = [0, 64], sizes = [8, 64], strides = [1, 1]} : vector<8x192xf32> to vector<8x64xf32>
    %70 = vector.extract_strided_slice %67 {offsets = [0, 128], sizes = [8, 64], strides = [1, 1]} : vector<8x192xf32> to vector<8x64xf32>
    %71 = vector.extract_strided_slice %61 {offsets = [0, 192], sizes = [8, 64], strides = [1, 1]} : vector<8x256xf32> to vector<8x64xf32>
    %72 = math.tanh %71 : vector<8x64xf32>
    %73 = arith.mulf %69, %28 : vector<8x64xf32>
    %74 = arith.mulf %68, %72 : vector<8x64xf32>
    %75 = arith.addf %73, %74 : vector<8x64xf32>
    %76 = math.tanh %75 : vector<8x64xf32>
    %77 = arith.mulf %70, %76 : vector<8x64xf32>
    %c2_i32 = arith.constant 2 : i32
    %c0_35 = arith.constant 0 : index
    %c0_36 = arith.constant 0 : index
    %78 = vector.load %arg5[%c0_35, %c0_36] : memref<64x256xf32, #tpu.memory_space<vmem>>, vector<64x256xf32>
    %cst_37 = arith.constant dense<0.000000e+00> : vector<8x256xf32>
    %79 = tpu.matmul %77, %78, %cst_37 {dimension_numbers = #tpu.dot_dimension_numbers<[1], [0], [0], [1], [0, 0, 1, 1], [], []>} : vector<8x64xf32>, vector<64x256xf32>, vector<8x256xf32> -> vector<8x256xf32>
    %c0_38 = arith.constant 0 : index
    %c0_39 = arith.constant 0 : index
    %80 = vector.load %arg6[%c0_38, %c0_39] : memref<64x256xf32, #tpu.memory_space<vmem>>, vector<64x256xf32>
    %cst_40 = arith.constant dense<0.000000e+00> : vector<8x256xf32>
    %81 = tpu.matmul %53, %80, %cst_40 {dimension_numbers = #tpu.dot_dimension_numbers<[1], [0], [0], [1], [0, 0, 1, 1], [], []>} : vector<8x64xf32>, vector<64x256xf32>, vector<8x256xf32> -> vector<8x256xf32>
    %82 = arith.addf %79, %81 : vector<8x256xf32>
    %83 = vector.broadcast %3 : vector<1x256xf32> to vector<8x256xf32>
    %84 = arith.addf %82, %83 : vector<8x256xf32>
    %85 = vector.extract_strided_slice %84 {offsets = [0, 0], sizes = [8, 192], strides = [1, 1]} : vector<8x256xf32> to vector<8x192xf32>
    %86 = arith.negf %85 : vector<8x192xf32>
    %87 = math.exp %86 : vector<8x192xf32>
    %cst_41 = arith.constant 1.000000e+00 : f32
    %88 = vector.broadcast %cst_41 : f32 to vector<8x192xf32>
    %89 = arith.addf %88, %87 : vector<8x192xf32>
    %90 = arith.divf %88, %89 : vector<8x192xf32>
    %91 = vector.extract_strided_slice %90 {offsets = [0, 0], sizes = [8, 64], strides = [1, 1]} : vector<8x192xf32> to vector<8x64xf32>
    %92 = vector.extract_strided_slice %90 {offsets = [0, 64], sizes = [8, 64], strides = [1, 1]} : vector<8x192xf32> to vector<8x64xf32>
    %93 = vector.extract_strided_slice %90 {offsets = [0, 128], sizes = [8, 64], strides = [1, 1]} : vector<8x192xf32> to vector<8x64xf32>
    %94 = vector.extract_strided_slice %84 {offsets = [0, 192], sizes = [8, 64], strides = [1, 1]} : vector<8x256xf32> to vector<8x64xf32>
    %95 = math.tanh %94 : vector<8x64xf32>
    %96 = arith.mulf %92, %51 : vector<8x64xf32>
    %97 = arith.mulf %91, %95 : vector<8x64xf32>
    %98 = arith.addf %96, %97 : vector<8x64xf32>
    %99 = math.tanh %98 : vector<8x64xf32>
    %100 = arith.mulf %93, %99 : vector<8x64xf32>
    %101 = arith.index_cast %c2_i32 : i32 to index
    %c0_42 = arith.constant 0 : index
    %c0_43 = arith.constant 0 : index
    %102 = vector.load %arg2[%101, %c0_42, %c0_43] : memref<8x8x8xf32, #tpu.memory_space<vmem>>, vector<1x8x8xf32>
    %103 = vector.shape_cast %102 : vector<1x8x8xf32> to vector<8x8xf32>
    %c0_44 = arith.constant 0 : index
    %c0_45 = arith.constant 0 : index
    %104 = vector.load %arg3[%c0_44, %c0_45] : memref<8x256xf32, #tpu.memory_space<vmem>>, vector<8x256xf32>
    %cst_46 = arith.constant dense<0.000000e+00> : vector<8x256xf32>
    %105 = tpu.matmul %103, %104, %cst_46 {dimension_numbers = #tpu.dot_dimension_numbers<[1], [0], [0], [1], [0, 0, 1, 1], [], []>} : vector<8x8xf32>, vector<8x256xf32>, vector<8x256xf32> -> vector<8x256xf32>
    %c0_47 = arith.constant 0 : index
    %c0_48 = arith.constant 0 : index
    %106 = vector.load %arg4[%c0_47, %c0_48] : memref<64x256xf32, #tpu.memory_space<vmem>>, vector<64x256xf32>
    %cst_49 = arith.constant dense<0.000000e+00> : vector<8x256xf32>
    %107 = tpu.matmul %77, %106, %cst_49 {dimension_numbers = #tpu.dot_dimension_numbers<[1], [0], [0], [1], [0, 0, 1, 1], [], []>} : vector<8x64xf32>, vector<64x256xf32>, vector<8x256xf32> -> vector<8x256xf32>
    %108 = arith.addf %105, %107 : vector<8x256xf32>
    %109 = vector.extract_strided_slice %108 {offsets = [0, 0], sizes = [8, 192], strides = [1, 1]} : vector<8x256xf32> to vector<8x192xf32>
    %110 = arith.negf %109 : vector<8x192xf32>
    %111 = math.exp %110 : vector<8x192xf32>
    %cst_50 = arith.constant 1.000000e+00 : f32
    %112 = vector.broadcast %cst_50 : f32 to vector<8x192xf32>
    %113 = arith.addf %112, %111 : vector<8x192xf32>
    %114 = arith.divf %112, %113 : vector<8x192xf32>
    %115 = vector.extract_strided_slice %114 {offsets = [0, 0], sizes = [8, 64], strides = [1, 1]} : vector<8x192xf32> to vector<8x64xf32>
    %116 = vector.extract_strided_slice %114 {offsets = [0, 64], sizes = [8, 64], strides = [1, 1]} : vector<8x192xf32> to vector<8x64xf32>
    %117 = vector.extract_strided_slice %114 {offsets = [0, 128], sizes = [8, 64], strides = [1, 1]} : vector<8x192xf32> to vector<8x64xf32>
    %118 = vector.extract_strided_slice %108 {offsets = [0, 192], sizes = [8, 64], strides = [1, 1]} : vector<8x256xf32> to vector<8x64xf32>
    %119 = math.tanh %118 : vector<8x64xf32>
    %120 = arith.mulf %116, %75 : vector<8x64xf32>
    %121 = arith.mulf %115, %119 : vector<8x64xf32>
    %122 = arith.addf %120, %121 : vector<8x64xf32>
    %123 = math.tanh %122 : vector<8x64xf32>
    %124 = arith.mulf %117, %123 : vector<8x64xf32>
    %c3_i32 = arith.constant 3 : i32
    %c0_51 = arith.constant 0 : index
    %c0_52 = arith.constant 0 : index
    %125 = vector.load %arg5[%c0_51, %c0_52] : memref<64x256xf32, #tpu.memory_space<vmem>>, vector<64x256xf32>
    %cst_53 = arith.constant dense<0.000000e+00> : vector<8x256xf32>
    %126 = tpu.matmul %124, %125, %cst_53 {dimension_numbers = #tpu.dot_dimension_numbers<[1], [0], [0], [1], [0, 0, 1, 1], [], []>} : vector<8x64xf32>, vector<64x256xf32>, vector<8x256xf32> -> vector<8x256xf32>
    %c0_54 = arith.constant 0 : index
    %c0_55 = arith.constant 0 : index
    %127 = vector.load %arg6[%c0_54, %c0_55] : memref<64x256xf32, #tpu.memory_space<vmem>>, vector<64x256xf32>
    %cst_56 = arith.constant dense<0.000000e+00> : vector<8x256xf32>
    %128 = tpu.matmul %100, %127, %cst_56 {dimension_numbers = #tpu.dot_dimension_numbers<[1], [0], [0], [1], [0, 0, 1, 1], [], []>} : vector<8x64xf32>, vector<64x256xf32>, vector<8x256xf32> -> vector<8x256xf32>
    %129 = arith.addf %126, %128 : vector<8x256xf32>
    %130 = vector.broadcast %3 : vector<1x256xf32> to vector<8x256xf32>
    %131 = arith.addf %129, %130 : vector<8x256xf32>
    %132 = vector.extract_strided_slice %131 {offsets = [0, 0], sizes = [8, 192], strides = [1, 1]} : vector<8x256xf32> to vector<8x192xf32>
    %133 = arith.negf %132 : vector<8x192xf32>
    %134 = math.exp %133 : vector<8x192xf32>
    %cst_57 = arith.constant 1.000000e+00 : f32
    %135 = vector.broadcast %cst_57 : f32 to vector<8x192xf32>
    %136 = arith.addf %135, %134 : vector<8x192xf32>
    %137 = arith.divf %135, %136 : vector<8x192xf32>
    %138 = vector.extract_strided_slice %137 {offsets = [0, 0], sizes = [8, 64], strides = [1, 1]} : vector<8x192xf32> to vector<8x64xf32>
    %139 = vector.extract_strided_slice %137 {offsets = [0, 64], sizes = [8, 64], strides = [1, 1]} : vector<8x192xf32> to vector<8x64xf32>
    %140 = vector.extract_strided_slice %137 {offsets = [0, 128], sizes = [8, 64], strides = [1, 1]} : vector<8x192xf32> to vector<8x64xf32>
    %141 = vector.extract_strided_slice %131 {offsets = [0, 192], sizes = [8, 64], strides = [1, 1]} : vector<8x256xf32> to vector<8x64xf32>
    %142 = math.tanh %141 : vector<8x64xf32>
    %143 = arith.mulf %139, %98 : vector<8x64xf32>
    %144 = arith.mulf %138, %142 : vector<8x64xf32>
    %145 = arith.addf %143, %144 : vector<8x64xf32>
    %146 = math.tanh %145 : vector<8x64xf32>
    %147 = arith.mulf %140, %146 : vector<8x64xf32>
    %148 = arith.index_cast %c3_i32 : i32 to index
    %c0_58 = arith.constant 0 : index
    %c0_59 = arith.constant 0 : index
    %149 = vector.load %arg2[%148, %c0_58, %c0_59] : memref<8x8x8xf32, #tpu.memory_space<vmem>>, vector<1x8x8xf32>
    %150 = vector.shape_cast %149 : vector<1x8x8xf32> to vector<8x8xf32>
    %c0_60 = arith.constant 0 : index
    %c0_61 = arith.constant 0 : index
    %151 = vector.load %arg3[%c0_60, %c0_61] : memref<8x256xf32, #tpu.memory_space<vmem>>, vector<8x256xf32>
    %cst_62 = arith.constant dense<0.000000e+00> : vector<8x256xf32>
    %152 = tpu.matmul %150, %151, %cst_62 {dimension_numbers = #tpu.dot_dimension_numbers<[1], [0], [0], [1], [0, 0, 1, 1], [], []>} : vector<8x8xf32>, vector<8x256xf32>, vector<8x256xf32> -> vector<8x256xf32>
    %c0_63 = arith.constant 0 : index
    %c0_64 = arith.constant 0 : index
    %153 = vector.load %arg4[%c0_63, %c0_64] : memref<64x256xf32, #tpu.memory_space<vmem>>, vector<64x256xf32>
    %cst_65 = arith.constant dense<0.000000e+00> : vector<8x256xf32>
    %154 = tpu.matmul %124, %153, %cst_65 {dimension_numbers = #tpu.dot_dimension_numbers<[1], [0], [0], [1], [0, 0, 1, 1], [], []>} : vector<8x64xf32>, vector<64x256xf32>, vector<8x256xf32> -> vector<8x256xf32>
    %155 = arith.addf %152, %154 : vector<8x256xf32>
    %156 = vector.extract_strided_slice %155 {offsets = [0, 0], sizes = [8, 192], strides = [1, 1]} : vector<8x256xf32> to vector<8x192xf32>
    %157 = arith.negf %156 : vector<8x192xf32>
    %158 = math.exp %157 : vector<8x192xf32>
    %cst_66 = arith.constant 1.000000e+00 : f32
    %159 = vector.broadcast %cst_66 : f32 to vector<8x192xf32>
    %160 = arith.addf %159, %158 : vector<8x192xf32>
    %161 = arith.divf %159, %160 : vector<8x192xf32>
    %162 = vector.extract_strided_slice %161 {offsets = [0, 0], sizes = [8, 64], strides = [1, 1]} : vector<8x192xf32> to vector<8x64xf32>
    %163 = vector.extract_strided_slice %161 {offsets = [0, 64], sizes = [8, 64], strides = [1, 1]} : vector<8x192xf32> to vector<8x64xf32>
    %164 = vector.extract_strided_slice %161 {offsets = [0, 128], sizes = [8, 64], strides = [1, 1]} : vector<8x192xf32> to vector<8x64xf32>
    %165 = vector.extract_strided_slice %155 {offsets = [0, 192], sizes = [8, 64], strides = [1, 1]} : vector<8x256xf32> to vector<8x64xf32>
    %166 = math.tanh %165 : vector<8x64xf32>
    %167 = arith.mulf %163, %122 : vector<8x64xf32>
    %168 = arith.mulf %162, %166 : vector<8x64xf32>
    %169 = arith.addf %167, %168 : vector<8x64xf32>
    %170 = math.tanh %169 : vector<8x64xf32>
    %171 = arith.mulf %164, %170 : vector<8x64xf32>
    %c4_i32 = arith.constant 4 : i32
    %c0_67 = arith.constant 0 : index
    %c0_68 = arith.constant 0 : index
    %172 = vector.load %arg5[%c0_67, %c0_68] : memref<64x256xf32, #tpu.memory_space<vmem>>, vector<64x256xf32>
    %cst_69 = arith.constant dense<0.000000e+00> : vector<8x256xf32>
    %173 = tpu.matmul %171, %172, %cst_69 {dimension_numbers = #tpu.dot_dimension_numbers<[1], [0], [0], [1], [0, 0, 1, 1], [], []>} : vector<8x64xf32>, vector<64x256xf32>, vector<8x256xf32> -> vector<8x256xf32>
    %c0_70 = arith.constant 0 : index
    %c0_71 = arith.constant 0 : index
    %174 = vector.load %arg6[%c0_70, %c0_71] : memref<64x256xf32, #tpu.memory_space<vmem>>, vector<64x256xf32>
    %cst_72 = arith.constant dense<0.000000e+00> : vector<8x256xf32>
    %175 = tpu.matmul %147, %174, %cst_72 {dimension_numbers = #tpu.dot_dimension_numbers<[1], [0], [0], [1], [0, 0, 1, 1], [], []>} : vector<8x64xf32>, vector<64x256xf32>, vector<8x256xf32> -> vector<8x256xf32>
    %176 = arith.addf %173, %175 : vector<8x256xf32>
    %177 = vector.broadcast %3 : vector<1x256xf32> to vector<8x256xf32>
    %178 = arith.addf %176, %177 : vector<8x256xf32>
    %179 = vector.extract_strided_slice %178 {offsets = [0, 0], sizes = [8, 192], strides = [1, 1]} : vector<8x256xf32> to vector<8x192xf32>
    %180 = arith.negf %179 : vector<8x192xf32>
    %181 = math.exp %180 : vector<8x192xf32>
    %cst_73 = arith.constant 1.000000e+00 : f32
    %182 = vector.broadcast %cst_73 : f32 to vector<8x192xf32>
    %183 = arith.addf %182, %181 : vector<8x192xf32>
    %184 = arith.divf %182, %183 : vector<8x192xf32>
    %185 = vector.extract_strided_slice %184 {offsets = [0, 0], sizes = [8, 64], strides = [1, 1]} : vector<8x192xf32> to vector<8x64xf32>
    %186 = vector.extract_strided_slice %184 {offsets = [0, 64], sizes = [8, 64], strides = [1, 1]} : vector<8x192xf32> to vector<8x64xf32>
    %187 = vector.extract_strided_slice %184 {offsets = [0, 128], sizes = [8, 64], strides = [1, 1]} : vector<8x192xf32> to vector<8x64xf32>
    %188 = vector.extract_strided_slice %178 {offsets = [0, 192], sizes = [8, 64], strides = [1, 1]} : vector<8x256xf32> to vector<8x64xf32>
    %189 = math.tanh %188 : vector<8x64xf32>
    %190 = arith.mulf %186, %145 : vector<8x64xf32>
    %191 = arith.mulf %185, %189 : vector<8x64xf32>
    %192 = arith.addf %190, %191 : vector<8x64xf32>
    %193 = math.tanh %192 : vector<8x64xf32>
    %194 = arith.mulf %187, %193 : vector<8x64xf32>
    %195 = arith.index_cast %c4_i32 : i32 to index
    %c0_74 = arith.constant 0 : index
    %c0_75 = arith.constant 0 : index
    %196 = vector.load %arg2[%195, %c0_74, %c0_75] : memref<8x8x8xf32, #tpu.memory_space<vmem>>, vector<1x8x8xf32>
    %197 = vector.shape_cast %196 : vector<1x8x8xf32> to vector<8x8xf32>
    %c0_76 = arith.constant 0 : index
    %c0_77 = arith.constant 0 : index
    %198 = vector.load %arg3[%c0_76, %c0_77] : memref<8x256xf32, #tpu.memory_space<vmem>>, vector<8x256xf32>
    %cst_78 = arith.constant dense<0.000000e+00> : vector<8x256xf32>
    %199 = tpu.matmul %197, %198, %cst_78 {dimension_numbers = #tpu.dot_dimension_numbers<[1], [0], [0], [1], [0, 0, 1, 1], [], []>} : vector<8x8xf32>, vector<8x256xf32>, vector<8x256xf32> -> vector<8x256xf32>
    %c0_79 = arith.constant 0 : index
    %c0_80 = arith.constant 0 : index
    %200 = vector.load %arg4[%c0_79, %c0_80] : memref<64x256xf32, #tpu.memory_space<vmem>>, vector<64x256xf32>
    %cst_81 = arith.constant dense<0.000000e+00> : vector<8x256xf32>
    %201 = tpu.matmul %171, %200, %cst_81 {dimension_numbers = #tpu.dot_dimension_numbers<[1], [0], [0], [1], [0, 0, 1, 1], [], []>} : vector<8x64xf32>, vector<64x256xf32>, vector<8x256xf32> -> vector<8x256xf32>
    %202 = arith.addf %199, %201 : vector<8x256xf32>
    %203 = vector.extract_strided_slice %202 {offsets = [0, 0], sizes = [8, 192], strides = [1, 1]} : vector<8x256xf32> to vector<8x192xf32>
    %204 = arith.negf %203 : vector<8x192xf32>
    %205 = math.exp %204 : vector<8x192xf32>
    %cst_82 = arith.constant 1.000000e+00 : f32
    %206 = vector.broadcast %cst_82 : f32 to vector<8x192xf32>
    %207 = arith.addf %206, %205 : vector<8x192xf32>
    %208 = arith.divf %206, %207 : vector<8x192xf32>
    %209 = vector.extract_strided_slice %208 {offsets = [0, 0], sizes = [8, 64], strides = [1, 1]} : vector<8x192xf32> to vector<8x64xf32>
    %210 = vector.extract_strided_slice %208 {offsets = [0, 64], sizes = [8, 64], strides = [1, 1]} : vector<8x192xf32> to vector<8x64xf32>
    %211 = vector.extract_strided_slice %208 {offsets = [0, 128], sizes = [8, 64], strides = [1, 1]} : vector<8x192xf32> to vector<8x64xf32>
    %212 = vector.extract_strided_slice %202 {offsets = [0, 192], sizes = [8, 64], strides = [1, 1]} : vector<8x256xf32> to vector<8x64xf32>
    %213 = math.tanh %212 : vector<8x64xf32>
    %214 = arith.mulf %210, %169 : vector<8x64xf32>
    %215 = arith.mulf %209, %213 : vector<8x64xf32>
    %216 = arith.addf %214, %215 : vector<8x64xf32>
    %217 = math.tanh %216 : vector<8x64xf32>
    %218 = arith.mulf %211, %217 : vector<8x64xf32>
    %c5_i32 = arith.constant 5 : i32
    %c0_83 = arith.constant 0 : index
    %c0_84 = arith.constant 0 : index
    %219 = vector.load %arg5[%c0_83, %c0_84] : memref<64x256xf32, #tpu.memory_space<vmem>>, vector<64x256xf32>
    %cst_85 = arith.constant dense<0.000000e+00> : vector<8x256xf32>
    %220 = tpu.matmul %218, %219, %cst_85 {dimension_numbers = #tpu.dot_dimension_numbers<[1], [0], [0], [1], [0, 0, 1, 1], [], []>} : vector<8x64xf32>, vector<64x256xf32>, vector<8x256xf32> -> vector<8x256xf32>
    %c0_86 = arith.constant 0 : index
    %c0_87 = arith.constant 0 : index
    %221 = vector.load %arg6[%c0_86, %c0_87] : memref<64x256xf32, #tpu.memory_space<vmem>>, vector<64x256xf32>
    %cst_88 = arith.constant dense<0.000000e+00> : vector<8x256xf32>
    %222 = tpu.matmul %194, %221, %cst_88 {dimension_numbers = #tpu.dot_dimension_numbers<[1], [0], [0], [1], [0, 0, 1, 1], [], []>} : vector<8x64xf32>, vector<64x256xf32>, vector<8x256xf32> -> vector<8x256xf32>
    %223 = arith.addf %220, %222 : vector<8x256xf32>
    %224 = vector.broadcast %3 : vector<1x256xf32> to vector<8x256xf32>
    %225 = arith.addf %223, %224 : vector<8x256xf32>
    %226 = vector.extract_strided_slice %225 {offsets = [0, 0], sizes = [8, 192], strides = [1, 1]} : vector<8x256xf32> to vector<8x192xf32>
    %227 = arith.negf %226 : vector<8x192xf32>
    %228 = math.exp %227 : vector<8x192xf32>
    %cst_89 = arith.constant 1.000000e+00 : f32
    %229 = vector.broadcast %cst_89 : f32 to vector<8x192xf32>
    %230 = arith.addf %229, %228 : vector<8x192xf32>
    %231 = arith.divf %229, %230 : vector<8x192xf32>
    %232 = vector.extract_strided_slice %231 {offsets = [0, 0], sizes = [8, 64], strides = [1, 1]} : vector<8x192xf32> to vector<8x64xf32>
    %233 = vector.extract_strided_slice %231 {offsets = [0, 64], sizes = [8, 64], strides = [1, 1]} : vector<8x192xf32> to vector<8x64xf32>
    %234 = vector.extract_strided_slice %231 {offsets = [0, 128], sizes = [8, 64], strides = [1, 1]} : vector<8x192xf32> to vector<8x64xf32>
    %235 = vector.extract_strided_slice %225 {offsets = [0, 192], sizes = [8, 64], strides = [1, 1]} : vector<8x256xf32> to vector<8x64xf32>
    %236 = math.tanh %235 : vector<8x64xf32>
    %237 = arith.mulf %233, %192 : vector<8x64xf32>
    %238 = arith.mulf %232, %236 : vector<8x64xf32>
    %239 = arith.addf %237, %238 : vector<8x64xf32>
    %240 = math.tanh %239 : vector<8x64xf32>
    %241 = arith.mulf %234, %240 : vector<8x64xf32>
    %242 = arith.index_cast %c5_i32 : i32 to index
    %c0_90 = arith.constant 0 : index
    %c0_91 = arith.constant 0 : index
    %243 = vector.load %arg2[%242, %c0_90, %c0_91] : memref<8x8x8xf32, #tpu.memory_space<vmem>>, vector<1x8x8xf32>
    %244 = vector.shape_cast %243 : vector<1x8x8xf32> to vector<8x8xf32>
    %c0_92 = arith.constant 0 : index
    %c0_93 = arith.constant 0 : index
    %245 = vector.load %arg3[%c0_92, %c0_93] : memref<8x256xf32, #tpu.memory_space<vmem>>, vector<8x256xf32>
    %cst_94 = arith.constant dense<0.000000e+00> : vector<8x256xf32>
    %246 = tpu.matmul %244, %245, %cst_94 {dimension_numbers = #tpu.dot_dimension_numbers<[1], [0], [0], [1], [0, 0, 1, 1], [], []>} : vector<8x8xf32>, vector<8x256xf32>, vector<8x256xf32> -> vector<8x256xf32>
    %c0_95 = arith.constant 0 : index
    %c0_96 = arith.constant 0 : index
    %247 = vector.load %arg4[%c0_95, %c0_96] : memref<64x256xf32, #tpu.memory_space<vmem>>, vector<64x256xf32>
    %cst_97 = arith.constant dense<0.000000e+00> : vector<8x256xf32>
    %248 = tpu.matmul %218, %247, %cst_97 {dimension_numbers = #tpu.dot_dimension_numbers<[1], [0], [0], [1], [0, 0, 1, 1], [], []>} : vector<8x64xf32>, vector<64x256xf32>, vector<8x256xf32> -> vector<8x256xf32>
    %249 = arith.addf %246, %248 : vector<8x256xf32>
    %250 = vector.extract_strided_slice %249 {offsets = [0, 0], sizes = [8, 192], strides = [1, 1]} : vector<8x256xf32> to vector<8x192xf32>
    %251 = arith.negf %250 : vector<8x192xf32>
    %252 = math.exp %251 : vector<8x192xf32>
    %cst_98 = arith.constant 1.000000e+00 : f32
    %253 = vector.broadcast %cst_98 : f32 to vector<8x192xf32>
    %254 = arith.addf %253, %252 : vector<8x192xf32>
    %255 = arith.divf %253, %254 : vector<8x192xf32>
    %256 = vector.extract_strided_slice %255 {offsets = [0, 0], sizes = [8, 64], strides = [1, 1]} : vector<8x192xf32> to vector<8x64xf32>
    %257 = vector.extract_strided_slice %255 {offsets = [0, 64], sizes = [8, 64], strides = [1, 1]} : vector<8x192xf32> to vector<8x64xf32>
    %258 = vector.extract_strided_slice %255 {offsets = [0, 128], sizes = [8, 64], strides = [1, 1]} : vector<8x192xf32> to vector<8x64xf32>
    %259 = vector.extract_strided_slice %249 {offsets = [0, 192], sizes = [8, 64], strides = [1, 1]} : vector<8x256xf32> to vector<8x64xf32>
    %260 = math.tanh %259 : vector<8x64xf32>
    %261 = arith.mulf %257, %216 : vector<8x64xf32>
    %262 = arith.mulf %256, %260 : vector<8x64xf32>
    %263 = arith.addf %261, %262 : vector<8x64xf32>
    %264 = math.tanh %263 : vector<8x64xf32>
    %265 = arith.mulf %258, %264 : vector<8x64xf32>
    %c6_i32 = arith.constant 6 : i32
    %c0_99 = arith.constant 0 : index
    %c0_100 = arith.constant 0 : index
    %266 = vector.load %arg5[%c0_99, %c0_100] : memref<64x256xf32, #tpu.memory_space<vmem>>, vector<64x256xf32>
    %cst_101 = arith.constant dense<0.000000e+00> : vector<8x256xf32>
    %267 = tpu.matmul %265, %266, %cst_101 {dimension_numbers = #tpu.dot_dimension_numbers<[1], [0], [0], [1], [0, 0, 1, 1], [], []>} : vector<8x64xf32>, vector<64x256xf32>, vector<8x256xf32> -> vector<8x256xf32>
    %c0_102 = arith.constant 0 : index
    %c0_103 = arith.constant 0 : index
    %268 = vector.load %arg6[%c0_102, %c0_103] : memref<64x256xf32, #tpu.memory_space<vmem>>, vector<64x256xf32>
    %cst_104 = arith.constant dense<0.000000e+00> : vector<8x256xf32>
    %269 = tpu.matmul %241, %268, %cst_104 {dimension_numbers = #tpu.dot_dimension_numbers<[1], [0], [0], [1], [0, 0, 1, 1], [], []>} : vector<8x64xf32>, vector<64x256xf32>, vector<8x256xf32> -> vector<8x256xf32>
    %270 = arith.addf %267, %269 : vector<8x256xf32>
    %271 = vector.broadcast %3 : vector<1x256xf32> to vector<8x256xf32>
    %272 = arith.addf %270, %271 : vector<8x256xf32>
    %273 = vector.extract_strided_slice %272 {offsets = [0, 0], sizes = [8, 192], strides = [1, 1]} : vector<8x256xf32> to vector<8x192xf32>
    %274 = arith.negf %273 : vector<8x192xf32>
    %275 = math.exp %274 : vector<8x192xf32>
    %cst_105 = arith.constant 1.000000e+00 : f32
    %276 = vector.broadcast %cst_105 : f32 to vector<8x192xf32>
    %277 = arith.addf %276, %275 : vector<8x192xf32>
    %278 = arith.divf %276, %277 : vector<8x192xf32>
    %279 = vector.extract_strided_slice %278 {offsets = [0, 0], sizes = [8, 64], strides = [1, 1]} : vector<8x192xf32> to vector<8x64xf32>
    %280 = vector.extract_strided_slice %278 {offsets = [0, 64], sizes = [8, 64], strides = [1, 1]} : vector<8x192xf32> to vector<8x64xf32>
    %281 = vector.extract_strided_slice %278 {offsets = [0, 128], sizes = [8, 64], strides = [1, 1]} : vector<8x192xf32> to vector<8x64xf32>
    %282 = vector.extract_strided_slice %272 {offsets = [0, 192], sizes = [8, 64], strides = [1, 1]} : vector<8x256xf32> to vector<8x64xf32>
    %283 = math.tanh %282 : vector<8x64xf32>
    %284 = arith.mulf %280, %239 : vector<8x64xf32>
    %285 = arith.mulf %279, %283 : vector<8x64xf32>
    %286 = arith.addf %284, %285 : vector<8x64xf32>
    %287 = math.tanh %286 : vector<8x64xf32>
    %288 = arith.mulf %281, %287 : vector<8x64xf32>
    %289 = arith.index_cast %c6_i32 : i32 to index
    %c0_106 = arith.constant 0 : index
    %c0_107 = arith.constant 0 : index
    %290 = vector.load %arg2[%289, %c0_106, %c0_107] : memref<8x8x8xf32, #tpu.memory_space<vmem>>, vector<1x8x8xf32>
    %291 = vector.shape_cast %290 : vector<1x8x8xf32> to vector<8x8xf32>
    %c0_108 = arith.constant 0 : index
    %c0_109 = arith.constant 0 : index
    %292 = vector.load %arg3[%c0_108, %c0_109] : memref<8x256xf32, #tpu.memory_space<vmem>>, vector<8x256xf32>
    %cst_110 = arith.constant dense<0.000000e+00> : vector<8x256xf32>
    %293 = tpu.matmul %291, %292, %cst_110 {dimension_numbers = #tpu.dot_dimension_numbers<[1], [0], [0], [1], [0, 0, 1, 1], [], []>} : vector<8x8xf32>, vector<8x256xf32>, vector<8x256xf32> -> vector<8x256xf32>
    %c0_111 = arith.constant 0 : index
    %c0_112 = arith.constant 0 : index
    %294 = vector.load %arg4[%c0_111, %c0_112] : memref<64x256xf32, #tpu.memory_space<vmem>>, vector<64x256xf32>
    %cst_113 = arith.constant dense<0.000000e+00> : vector<8x256xf32>
    %295 = tpu.matmul %265, %294, %cst_113 {dimension_numbers = #tpu.dot_dimension_numbers<[1], [0], [0], [1], [0, 0, 1, 1], [], []>} : vector<8x64xf32>, vector<64x256xf32>, vector<8x256xf32> -> vector<8x256xf32>
    %296 = arith.addf %293, %295 : vector<8x256xf32>
    %297 = vector.extract_strided_slice %296 {offsets = [0, 0], sizes = [8, 192], strides = [1, 1]} : vector<8x256xf32> to vector<8x192xf32>
    %298 = arith.negf %297 : vector<8x192xf32>
    %299 = math.exp %298 : vector<8x192xf32>
    %cst_114 = arith.constant 1.000000e+00 : f32
    %300 = vector.broadcast %cst_114 : f32 to vector<8x192xf32>
    %301 = arith.addf %300, %299 : vector<8x192xf32>
    %302 = arith.divf %300, %301 : vector<8x192xf32>
    %303 = vector.extract_strided_slice %302 {offsets = [0, 0], sizes = [8, 64], strides = [1, 1]} : vector<8x192xf32> to vector<8x64xf32>
    %304 = vector.extract_strided_slice %302 {offsets = [0, 64], sizes = [8, 64], strides = [1, 1]} : vector<8x192xf32> to vector<8x64xf32>
    %305 = vector.extract_strided_slice %302 {offsets = [0, 128], sizes = [8, 64], strides = [1, 1]} : vector<8x192xf32> to vector<8x64xf32>
    %306 = vector.extract_strided_slice %296 {offsets = [0, 192], sizes = [8, 64], strides = [1, 1]} : vector<8x256xf32> to vector<8x64xf32>
    %307 = math.tanh %306 : vector<8x64xf32>
    %308 = arith.mulf %304, %263 : vector<8x64xf32>
    %309 = arith.mulf %303, %307 : vector<8x64xf32>
    %310 = arith.addf %308, %309 : vector<8x64xf32>
    %311 = math.tanh %310 : vector<8x64xf32>
    %312 = arith.mulf %305, %311 : vector<8x64xf32>
    %c7_i32 = arith.constant 7 : i32
    %c0_115 = arith.constant 0 : index
    %c0_116 = arith.constant 0 : index
    %313 = vector.load %arg5[%c0_115, %c0_116] : memref<64x256xf32, #tpu.memory_space<vmem>>, vector<64x256xf32>
    %cst_117 = arith.constant dense<0.000000e+00> : vector<8x256xf32>
    %314 = tpu.matmul %312, %313, %cst_117 {dimension_numbers = #tpu.dot_dimension_numbers<[1], [0], [0], [1], [0, 0, 1, 1], [], []>} : vector<8x64xf32>, vector<64x256xf32>, vector<8x256xf32> -> vector<8x256xf32>
    %c0_118 = arith.constant 0 : index
    %c0_119 = arith.constant 0 : index
    %315 = vector.load %arg6[%c0_118, %c0_119] : memref<64x256xf32, #tpu.memory_space<vmem>>, vector<64x256xf32>
    %cst_120 = arith.constant dense<0.000000e+00> : vector<8x256xf32>
    %316 = tpu.matmul %288, %315, %cst_120 {dimension_numbers = #tpu.dot_dimension_numbers<[1], [0], [0], [1], [0, 0, 1, 1], [], []>} : vector<8x64xf32>, vector<64x256xf32>, vector<8x256xf32> -> vector<8x256xf32>
    %317 = arith.addf %314, %316 : vector<8x256xf32>
    %318 = vector.broadcast %3 : vector<1x256xf32> to vector<8x256xf32>
    %319 = arith.addf %317, %318 : vector<8x256xf32>
    %320 = vector.extract_strided_slice %319 {offsets = [0, 0], sizes = [8, 192], strides = [1, 1]} : vector<8x256xf32> to vector<8x192xf32>
    %321 = arith.negf %320 : vector<8x192xf32>
    %322 = math.exp %321 : vector<8x192xf32>
    %cst_121 = arith.constant 1.000000e+00 : f32
    %323 = vector.broadcast %cst_121 : f32 to vector<8x192xf32>
    %324 = arith.addf %323, %322 : vector<8x192xf32>
    %325 = arith.divf %323, %324 : vector<8x192xf32>
    %326 = vector.extract_strided_slice %325 {offsets = [0, 0], sizes = [8, 64], strides = [1, 1]} : vector<8x192xf32> to vector<8x64xf32>
    %327 = vector.extract_strided_slice %325 {offsets = [0, 64], sizes = [8, 64], strides = [1, 1]} : vector<8x192xf32> to vector<8x64xf32>
    %328 = vector.extract_strided_slice %325 {offsets = [0, 128], sizes = [8, 64], strides = [1, 1]} : vector<8x192xf32> to vector<8x64xf32>
    %329 = vector.extract_strided_slice %319 {offsets = [0, 192], sizes = [8, 64], strides = [1, 1]} : vector<8x256xf32> to vector<8x64xf32>
    %330 = math.tanh %329 : vector<8x64xf32>
    %331 = arith.mulf %327, %286 : vector<8x64xf32>
    %332 = arith.mulf %326, %330 : vector<8x64xf32>
    %333 = arith.addf %331, %332 : vector<8x64xf32>
    %334 = math.tanh %333 : vector<8x64xf32>
    %335 = arith.mulf %328, %334 : vector<8x64xf32>
    %336 = arith.index_cast %c7_i32 : i32 to index
    %c0_122 = arith.constant 0 : index
    %c0_123 = arith.constant 0 : index
    %337 = vector.load %arg2[%336, %c0_122, %c0_123] : memref<8x8x8xf32, #tpu.memory_space<vmem>>, vector<1x8x8xf32>
    %338 = vector.shape_cast %337 : vector<1x8x8xf32> to vector<8x8xf32>
    %c0_124 = arith.constant 0 : index
    %c0_125 = arith.constant 0 : index
    %339 = vector.load %arg3[%c0_124, %c0_125] : memref<8x256xf32, #tpu.memory_space<vmem>>, vector<8x256xf32>
    %cst_126 = arith.constant dense<0.000000e+00> : vector<8x256xf32>
    %340 = tpu.matmul %338, %339, %cst_126 {dimension_numbers = #tpu.dot_dimension_numbers<[1], [0], [0], [1], [0, 0, 1, 1], [], []>} : vector<8x8xf32>, vector<8x256xf32>, vector<8x256xf32> -> vector<8x256xf32>
    %c0_127 = arith.constant 0 : index
    %c0_128 = arith.constant 0 : index
    %341 = vector.load %arg4[%c0_127, %c0_128] : memref<64x256xf32, #tpu.memory_space<vmem>>, vector<64x256xf32>
    %cst_129 = arith.constant dense<0.000000e+00> : vector<8x256xf32>
    %342 = tpu.matmul %312, %341, %cst_129 {dimension_numbers = #tpu.dot_dimension_numbers<[1], [0], [0], [1], [0, 0, 1, 1], [], []>} : vector<8x64xf32>, vector<64x256xf32>, vector<8x256xf32> -> vector<8x256xf32>
    %343 = arith.addf %340, %342 : vector<8x256xf32>
    %344 = vector.extract_strided_slice %343 {offsets = [0, 0], sizes = [8, 192], strides = [1, 1]} : vector<8x256xf32> to vector<8x192xf32>
    %345 = arith.negf %344 : vector<8x192xf32>
    %346 = math.exp %345 : vector<8x192xf32>
    %cst_130 = arith.constant 1.000000e+00 : f32
    %347 = vector.broadcast %cst_130 : f32 to vector<8x192xf32>
    %348 = arith.addf %347, %346 : vector<8x192xf32>
    %349 = arith.divf %347, %348 : vector<8x192xf32>
    %350 = vector.extract_strided_slice %349 {offsets = [0, 0], sizes = [8, 64], strides = [1, 1]} : vector<8x192xf32> to vector<8x64xf32>
    %351 = vector.extract_strided_slice %349 {offsets = [0, 64], sizes = [8, 64], strides = [1, 1]} : vector<8x192xf32> to vector<8x64xf32>
    %352 = vector.extract_strided_slice %349 {offsets = [0, 128], sizes = [8, 64], strides = [1, 1]} : vector<8x192xf32> to vector<8x64xf32>
    %353 = vector.extract_strided_slice %343 {offsets = [0, 192], sizes = [8, 64], strides = [1, 1]} : vector<8x256xf32> to vector<8x64xf32>
    %354 = math.tanh %353 : vector<8x64xf32>
    %355 = arith.mulf %351, %310 : vector<8x64xf32>
    %356 = arith.mulf %350, %354 : vector<8x64xf32>
    %357 = arith.addf %355, %356 : vector<8x64xf32>
    %358 = math.tanh %357 : vector<8x64xf32>
    %359 = arith.mulf %352, %358 : vector<8x64xf32>
    %c7_i32_131 = arith.constant 7 : i32
    %c0_132 = arith.constant 0 : index
    %c0_133 = arith.constant 0 : index
    %360 = vector.load %arg5[%c0_132, %c0_133] : memref<64x256xf32, #tpu.memory_space<vmem>>, vector<64x256xf32>
    %cst_134 = arith.constant dense<0.000000e+00> : vector<8x256xf32>
    %361 = tpu.matmul %359, %360, %cst_134 {dimension_numbers = #tpu.dot_dimension_numbers<[1], [0], [0], [1], [0, 0, 1, 1], [], []>} : vector<8x64xf32>, vector<64x256xf32>, vector<8x256xf32> -> vector<8x256xf32>
    %c0_135 = arith.constant 0 : index
    %c0_136 = arith.constant 0 : index
    %362 = vector.load %arg6[%c0_135, %c0_136] : memref<64x256xf32, #tpu.memory_space<vmem>>, vector<64x256xf32>
    %cst_137 = arith.constant dense<0.000000e+00> : vector<8x256xf32>
    %363 = tpu.matmul %335, %362, %cst_137 {dimension_numbers = #tpu.dot_dimension_numbers<[1], [0], [0], [1], [0, 0, 1, 1], [], []>} : vector<8x64xf32>, vector<64x256xf32>, vector<8x256xf32> -> vector<8x256xf32>
    %364 = arith.addf %361, %363 : vector<8x256xf32>
    %365 = vector.broadcast %3 : vector<1x256xf32> to vector<8x256xf32>
    %366 = arith.addf %364, %365 : vector<8x256xf32>
    %367 = vector.extract_strided_slice %366 {offsets = [0, 0], sizes = [8, 192], strides = [1, 1]} : vector<8x256xf32> to vector<8x192xf32>
    %368 = arith.negf %367 : vector<8x192xf32>
    %369 = math.exp %368 : vector<8x192xf32>
    %cst_138 = arith.constant 1.000000e+00 : f32
    %370 = vector.broadcast %cst_138 : f32 to vector<8x192xf32>
    %371 = arith.addf %370, %369 : vector<8x192xf32>
    %372 = arith.divf %370, %371 : vector<8x192xf32>
    %373 = vector.extract_strided_slice %372 {offsets = [0, 0], sizes = [8, 64], strides = [1, 1]} : vector<8x192xf32> to vector<8x64xf32>
    %374 = vector.extract_strided_slice %372 {offsets = [0, 64], sizes = [8, 64], strides = [1, 1]} : vector<8x192xf32> to vector<8x64xf32>
    %375 = vector.extract_strided_slice %372 {offsets = [0, 128], sizes = [8, 64], strides = [1, 1]} : vector<8x192xf32> to vector<8x64xf32>
    %376 = vector.extract_strided_slice %366 {offsets = [0, 192], sizes = [8, 64], strides = [1, 1]} : vector<8x256xf32> to vector<8x64xf32>
    %377 = math.tanh %376 : vector<8x64xf32>
    %378 = arith.mulf %374, %333 : vector<8x64xf32>
    %379 = arith.mulf %373, %377 : vector<8x64xf32>
    %380 = arith.addf %378, %379 : vector<8x64xf32>
    %381 = math.tanh %380 : vector<8x64xf32>
    %382 = arith.mulf %375, %381 : vector<8x64xf32>
    %c0_139 = arith.constant 0 : index
    %c0_140 = arith.constant 0 : index
    %383 = vector.load %arg11[%c0_139, %c0_140] : memref<8x64xf32, #tpu.memory_space<vmem>>, vector<8x64xf32>
    tpu.vector_store %arg11[%c0_139, %c0_140], %359 {strides = array<i32>} : memref<8x64xf32, #tpu.memory_space<vmem>>, vector<8x64xf32>,
    %c0_141 = arith.constant 0 : index
    %c0_142 = arith.constant 0 : index
    %384 = vector.load %arg12[%c0_141, %c0_142] : memref<8x64xf32, #tpu.memory_space<vmem>>, vector<8x64xf32>
    tpu.vector_store %arg12[%c0_141, %c0_142], %357 {strides = array<i32>} : memref<8x64xf32, #tpu.memory_space<vmem>>, vector<8x64xf32>,
    %c0_143 = arith.constant 0 : index
    %c0_144 = arith.constant 0 : index
    %385 = vector.load %arg13[%c0_143, %c0_144] : memref<8x64xf32, #tpu.memory_space<vmem>>, vector<8x64xf32>
    tpu.vector_store %arg13[%c0_143, %c0_144], %382 {strides = array<i32>} : memref<8x64xf32, #tpu.memory_space<vmem>>, vector<8x64xf32>,
    %c0_145 = arith.constant 0 : index
    %c0_146 = arith.constant 0 : index
    %386 = vector.load %arg14[%c0_145, %c0_146] : memref<8x64xf32, #tpu.memory_space<vmem>>, vector<8x64xf32>
    tpu.vector_store %arg14[%c0_145, %c0_146], %380 {strides = array<i32>} : memref<8x64xf32, #tpu.memory_space<vmem>>, vector<8x64xf32>,
    %c0_i32_147 = arith.constant 0 : i32
    %387 = arith.cmpi eq, %arg1, %c0_i32_147 : i32
    %388 = arith.extui %387 : i1 to i32
    %c0_i32_148 = arith.constant 0 : i32
    %389 = arith.cmpi ne, %388, %c0_i32_148 : i32
    scf.if %389 {
      %c0_149 = arith.constant 0 : index
      %c0_150 = arith.constant 0 : index
      %390 = vector.load %arg8[%c0_149, %c0_150] : memref<64x2xf32, #tpu.memory_space<vmem>>, vector<64x2xf32>
      %cst_151 = arith.constant dense<0.000000e+00> : vector<8x2xf32>
      %391 = tpu.matmul %382, %390, %cst_151 {dimension_numbers = #tpu.dot_dimension_numbers<[1], [0], [0], [1], [0, 0, 1, 1], [], []>} : vector<8x64xf32>, vector<64x2xf32>, vector<8x2xf32> -> vector<8x2xf32>
      %c0_152 = arith.constant 0 : index
      %c0_153 = arith.constant 0 : index
      %392 = vector.load %arg9[%c0_152, %c0_153] : memref<1x2xf32, #tpu.memory_space<vmem>>, vector<1x2xf32>
      %393 = vector.broadcast %392 : vector<1x2xf32> to vector<8x2xf32>
      %394 = arith.addf %391, %393 : vector<8x2xf32>
      %c0_154 = arith.constant 0 : index
      %c0_155 = arith.constant 0 : index
      %395 = vector.load %arg10[%c0_154, %c0_155] : memref<8x2xf32, #tpu.memory_space<vmem>>, vector<8x2xf32>
      tpu.vector_store %arg10[%c0_154, %c0_155], %394 {strides = array<i32>} : memref<8x2xf32, #tpu.memory_space<vmem>>, vector<8x2xf32>,
    } else {
    }
    return
  }
  func.func @transform_0(%arg0: i32, %arg1: i32) -> (i32, i32, i32) {
    %c0_i32 = arith.constant 0 : i32
    %c0_i32_0 = arith.constant 0 : i32
    return %arg1, %arg0, %c0_i32 : i32, i32, i32
  }
  func.func @transform_1(%arg0: i32, %arg1: i32) -> (i32, i32) {
    %c0_i32 = arith.constant 0 : i32
    %c0_i32_0 = arith.constant 0 : i32
    %c0_i32_1 = arith.constant 0 : i32
    return %c0_i32, %c0_i32_0 : i32, i32
  }
  func.func @transform_2(%arg0: i32, %arg1: i32) -> (i32, i32) {
    %c0_i32 = arith.constant 0 : i32
    %c0_i32_0 = arith.constant 0 : i32
    %c0_i32_1 = arith.constant 0 : i32
    return %c0_i32, %c0_i32_0 : i32, i32
  }
  func.func @transform_3(%arg0: i32, %arg1: i32) -> (i32, i32) {
    %c0_i32 = arith.constant 0 : i32
    %c0_i32_0 = arith.constant 0 : i32
    %c0_i32_1 = arith.constant 0 : i32
    return %c0_i32, %c0_i32_0 : i32, i32
  }
  func.func @transform_4(%arg0: i32, %arg1: i32) -> (i32, i32) {
    %c0_i32 = arith.constant 0 : i32
    %c0_i32_0 = arith.constant 0 : i32
    %c0_i32_1 = arith.constant 0 : i32
    return %c0_i32, %c0_i32_0 : i32, i32
  }
  func.func @transform_5(%arg0: i32, %arg1: i32) -> (i32, i32) {
    %c0_i32 = arith.constant 0 : i32
    %c0_i32_0 = arith.constant 0 : i32
    %c0_i32_1 = arith.constant 0 : i32
    return %c0_i32, %c0_i32_0 : i32, i32
  }
  func.func @transform_6(%arg0: i32, %arg1: i32) -> (i32, i32) {
    %c0_i32 = arith.constant 0 : i32
    %c0_i32_0 = arith.constant 0 : i32
    %c0_i32_1 = arith.constant 0 : i32
    return %c0_i32, %c0_i32_0 : i32, i32
  }
  func.func @transform_7(%arg0: i32, %arg1: i32) -> (i32, i32) {
    %c0_i32 = arith.constant 0 : i32
    %c0_i32_0 = arith.constant 0 : i32
    %c0_i32_1 = arith.constant 0 : i32
    return %c0_i32, %c0_i32_0 : i32, i32
  }
  func.func @transform_8(%arg0: i32, %arg1: i32) -> (i32, i32) {
    %c0_i32 = arith.constant 0 : i32
    %c0_i32_0 = arith.constant 0 : i32
    return %arg0, %c0_i32 : i32, i32
  }
}

</mosaic_0001>

<bundles_post_ra>
// kernel: tpu_custom_call.1
= control target key start
LH: loop header
LB: loop body
LE: loop exit
PB: predicated region body
PF: predicated region fallthrough
CT: control target
= control target key end

     0   :  { %13 = vsyncpa [#allocation7], 0  ;;  %s4611_s0 = inlined_call_operand.vmem [shape: f32[8,8,8], index: 0, kind: input, shape index: {}]   ;;  %s4612_s1 = inlined_call_operand.hbm [shape: f32[8,256], index: 1, kind: input, shape index: {}]   ;;  %s4613_s2 = inlined_call_operand.hbm [shape: f32[64,256], index: 2, kind: input, shape index: {}]   ;;  %s4614_s3 = inlined_call_operand.hbm [shape: f32[64,256], index: 3, kind: input, shape index: {}]   ;;  %s4615_s4 = inlined_call_operand.hbm [shape: f32[64,256], index: 4, kind: input, shape index: {}]   ;;  %s4616_s5 = inlined_call_operand.vmem [shape: f32[1,256], index: 5, kind: input, shape index: {}]   ;;  %s4617_s6 = inlined_call_operand.vmem [shape: f32[64,2], index: 6, kind: input, shape index: {}]   ;;  %s4618_s7 = inlined_call_operand.vmem [shape: f32[1,2], index: 7, kind: input, shape index: {}]   ;;  %s4619_s8 = inlined_call_operand.vmem [shape: f32[8,2], index: 8, kind: output, shape index: {}]  }
   0x1   :  { %14 = vsyncpa [#allocation9], 0 }
   0x2   :  { %15 = vsyncpa [#allocation12], 0  ;;  %s3964_s27 = smov [#allocation8]   ;;  %s3870_s9 = scalar_lea.hbm %s4613_s2, 2048 }
   0x3   :  { %s33_s28 = sshll.u32 %s3964_s27, 4  ;;  %p3871_p0 = scmp.ne.s32.totalorder %s4613_s2, %s3870_s9  ;;  %s34_s28 = int_to_ptr.vmem [resolvable:$true] %s33_s28 }
   0x4   :  { %p3874_p1 = scmp.lt.u32.totalorder %s3870_s9, %s4613_s2 }
   0x6   :  { %p3876_p2 = pnand %p3874_p1, %p3871_p0 }
   0x8   :  { %3879 = shalt.err (!%p3876_p2)
}
   0x9   :  { %s3880_s14 = scalar_lea.vmem %s34_s28, 2048  ;;  %p3885_p4 = scmp.lt.s32.totalorder %s34_s28, %s34_s28 }
   0xa   :  { %p3881_p3 = scmp.ne.s32.totalorder %s34_s28, %s3880_s14  ;;  %p3886_p5 = scmp.lt.s32.totalorder %s3880_s14, %s3880_s14 }
   0xc   :  { %p3887_p6 = por %p3886_p5, %p3885_p4 }
   0xe   :  { %p3888_p7 = pnand %p3887_p6, %p3881_p3 }
  0x10   :  { %3891 = shalt.err (!%p3888_p7)
}
  0x11   :  { %s3965_s15 = smov 256   ;;  %s3966_s16 = smov 16  }
  0x12   :  { %39 = dma.hbm_to_vmem [thread:$0]  %s4613_s2, 2048, %s34_s28, [#allocation9], %s3965_s15, %s3965_s15, %s3966_s16  }
  0x13   :  { %s3967_s19 = smov [#allocation6]   ;;  %s3968_s21 = smov [#allocation10]  }
  0x14   :  { %s24_s20 = sshll.u32 %s3967_s19, 4  ;;  %s45_s22 = sshll.u32 %s3968_s21, 4  ;;  %s25_s20 = int_to_ptr.vmem [resolvable:$true] %s24_s20  ;;  %s46_s22 = int_to_ptr.vmem [resolvable:$true] %s45_s22 }
  0x15   :  { %s3892_s25 = scalar_lea.hbm %s4612_s1, 256 }
  0x16   :  { %p3893_p8 = scmp.ne.s32.totalorder %s4612_s1, %s3892_s25  ;;  %p3896_p9 = scmp.lt.u32.totalorder %s3892_s25, %s4612_s1 }
  0x18   :  { %p3898_p10 = pnand %p3896_p9, %p3893_p8 }
  0x1a   :  { %3901 = shalt.err (!%p3898_p10)
}
  0x1b   :  { %s3902_s2 = scalar_lea.vmem %s25_s20, 256  ;;  %p3907_p12 = scmp.lt.s32.totalorder %s25_s20, %s25_s20 }
  0x1c   :  { %p3903_p11 = scmp.ne.s32.totalorder %s25_s20, %s3902_s2  ;;  %p3908_p13 = scmp.lt.s32.totalorder %s3902_s2, %s3902_s2 }
  0x1e   :  { %p3909_p0 = por %p3908_p13, %p3907_p12 }
  0x20   :  { %p3910_p1 = pnand %p3909_p0, %p3903_p11 }
  0x22   :  { %3913 = shalt.err (!%p3910_p1)
}
  0x23   :  { %27 = dma.hbm_to_vmem [thread:$0]  %s4612_s1, 256, %s25_s20, [#allocation7]  }
  0x24   :  { %s3914_s12 = scalar_lea.hbm %s4614_s3, 2048 }
  0x25   :  { %p3915_p2 = scmp.ne.s32.totalorder %s4614_s3, %s3914_s12  ;;  %p3918_p3 = scmp.lt.u32.totalorder %s3914_s12, %s4614_s3 }
  0x27   :  { %p3920_p4 = pnand %p3918_p3, %p3915_p2 }
  0x29   :  { %3923 = shalt.err (!%p3920_p4)
}
  0x2a   :  { %s3924_s19 = scalar_lea.vmem %s46_s22, 2048  ;;  %p3929_p6 = scmp.lt.s32.totalorder %s46_s22, %s46_s22 }
  0x2b   :  { %p3925_p5 = scmp.ne.s32.totalorder %s46_s22, %s3924_s19  ;;  %p3930_p7 = scmp.lt.s32.totalorder %s3924_s19, %s3924_s19 }
  0x2d   :  { %p3931_p8 = por %p3930_p7, %p3929_p6 }
  0x2f   :  { %p3932_p9 = pnand %p3931_p8, %p3925_p5 }
  0x31   :  { %3935 = shalt.err (!%p3932_p9)
}
  0x32   :  { %51 = dma.hbm_to_vmem [thread:$0]  %s4614_s3, 2048, %s46_s22, [#allocation9], %s3965_s15, %s3965_s15, %s3966_s16  }
  0x33   :  { %s3969_s21 = smov [#allocation11]   ;;  %s3936_s26 = scalar_lea.hbm %s4615_s4, 2048 }
  0x34   :  { %s57_s23 = sshll.u32 %s3969_s21, 4  ;;  %p3937_p10 = scmp.ne.s32.totalorder %s4615_s4, %s3936_s26  ;;  %s58_s23 = int_to_ptr.vmem [resolvable:$true] %s57_s23 }
  0x35   :  { %p3940_p11 = scmp.lt.u32.totalorder %s3936_s26, %s4615_s4 }
  0x37   :  { %p3942_p12 = pnand %p3940_p11, %p3937_p10 }
  0x39   :  { %3945 = shalt.err (!%p3942_p12)
}
  0x3a   :  { %s3946_s28 = scalar_lea.vmem %s58_s23, 2048  ;;  %p3951_p0 = scmp.lt.s32.totalorder %s58_s23, %s58_s23 }
  0x3b   :  { %p3947_p13 = scmp.ne.s32.totalorder %s58_s23, %s3946_s28  ;;  %p3952_p1 = scmp.lt.s32.totalorder %s3946_s28, %s3946_s28 }
  0x3d   :  { %p3953_p2 = por %p3952_p1, %p3951_p0 }
  0x3f   :  { %p3954_p3 = pnand %p3953_p2, %p3947_p13 }
  0x41   :  { %3957 = shalt.err (!%p3954_p3)
}
  0x42   :  { %63 = dma.hbm_to_vmem [thread:$0]  %s4615_s4, 2048, %s58_s23, [#allocation12], %s3965_s15, %s3965_s15, %s3966_s16  }
  0x43   :  { %3958 = dma.done.wait [#allocation7], 256  }
  0x44   :  { %3959 = vsyncadd [#allocation7], 4294967040 }
  0x45   :  { %3960 = dma.done.wait [#allocation9], 4096  }
  0x46   :  { %3961 = vsyncadd [#allocation9], 4294963200 }
  0x47   :  { %3962 = dma.done.wait [#allocation12], 2048  }
  0x48   :  { %3963 = vsyncadd [#allocation12], 4294965248  ;;  %vm86_vm0 = vcmask 523264   ;;  %v3970_v0 = vmov 0.0   ;;  %v100_v1 = vld [vmem:[#allocation8 + $0x8] sm:$0xff]  ;;  %v102_v2 = vld [vmem:[#allocation8 + $0x18] sm:$0xff] }
  0x49   :  { %183 = vmatprep.mubr.f32.mxu0 %v3970_v0  ;;  %87 = vst.msk [vmem:[#allocation2] sm:$0xff] %vm86_vm0, %v3970_v0  ;;  %88 = vst.msk [vmem:[#allocation3] sm:$0xff] %vm86_vm0, %v3970_v0  ;;  %398 = vmatprep.mubr.f32.mxu1 %v3970_v0  ;;  %v99_v3 = vld [vmem:[#allocation8] sm:$0xff]  ;;  %v4086_v4 = vpack.c.bf16 %v102_v2, %v100_v1  ;;  %v101_v5 = vld [vmem:[#allocation8 + $0x10] sm:$0xff]  ;;  %vm190_vm1 = vcmask 64512   ;;  %s3971_s16 = smov 64  }
  0x4a   :  { %89 = vst.msk [vmem:[#allocation4] sm:$0xff] %vm86_vm0, %v3970_v0  ;;  %90 = vst.msk [vmem:[#allocation5] sm:$0xff] %vm86_vm0, %v3970_v0  ;;  %v104_v6 = vld [vmem:[#allocation8 + $0x28] sm:$0xff]  ;;  %v106_v7 = vld [vmem:[#allocation8 + $0x38] sm:$0xff]  ;;  %v4088_v8 = vpack.c.bf16 %v101_v5, %v99_v3  ;;  %vm3973_vm2 = vmmov 0   ;;  %vm3128_vm3 = vcmask 15360  }
  0x4b   :  { %v4090_v9 = vpack.c.bf16 %v106_v7, %v104_v6  ;;  %v103_v10 = vld [vmem:[#allocation8 + $0x20] sm:$0xff]  ;;  %v105_v11 = vld [vmem:[#allocation8 + $0x30] sm:$0xff]  ;;  %v108_v12 = vld [vmem:[#allocation8 + $0x48] sm:$0xff]  ;;  %3239 = vmatprep.subr.bf16.mxu0 %v4086_v4 }
  0x4c   :  { %v110_v13 = vld [vmem:[#allocation8 + $0x58] sm:$0xff]  ;;  %3241 = vmatpush1.bf16.msra.mxu0 %v4088_v8  ;;  %v4094_v14 = vpack.c.bf16 %v105_v11, %v103_v10  ;;  %v107_v16 = vld [vmem:[#allocation8 + $0x40] sm:$0xff]  ;;  %v109_v17 = vld [vmem:[#allocation8 + $0x50] sm:$0xff] }
  0x4d   :  { %3243 = vmatprep.subr.bf16.mxu0 %v4090_v9  ;;  %v4097_v15 = vpack.c.bf16 %v110_v13, %v108_v12  ;;  %v112_v18 = vld [vmem:[#allocation8 + $0x68] sm:$0xff]  ;;  %v114_v19 = vld [vmem:[#allocation8 + $0x78] sm:$0xff]  ;;  %v4100_v20 = vpack.c.bf16 %v109_v17, %v107_v16  ;;  %v111_v22 = vld [vmem:[#allocation8 + $0x60] sm:$0xff] }
  0x4e   :  { %v4103_v21 = vpack.c.bf16 %v114_v19, %v112_v18  ;;  %v113_v23 = vld [vmem:[#allocation8 + $0x70] sm:$0xff]  ;;  %v4109_v25 = vld [vmem:[#allocation6 + $0x8] sm:$0xff]  ;;  %v316_v39 = vld [vmem:[#allocation11 + $0x8] sm:$0xff] }
  0x4f   :  { %v4106_v24 = vpack.c.bf16 %v113_v23, %v111_v22  ;;  %v4113_v27 = vld [vmem:[#allocation6] sm:$0xff]  ;;  %v318_v40 = vld [vmem:[#allocation11 + $0x18] sm:$0xff]  ;;  %v315_v41 = vld [vmem:[#allocation11] sm:$0xff] }
  0x50   :  { %3245 = vmatpush1.bf16.msra.mxu0 %v4094_v14  ;;  %v92_v26 = vld [vmem:[#allocation2] sm:$0xff]  ;;  %v93_v32 = vld [vmem:[#allocation3] sm:$0xff]  ;;  %v4141_v42 = vpack.c.bf16 %v318_v40, %v316_v39  ;;  %v320_v44 = vld [vmem:[#allocation11 + $0x28] sm:$0xff] }
  0x51   :  { %3247 = vmatprep.subr.bf16.mxu0 %v4097_v15  ;;  %v96_v28 = vld [vmem:[%s4611_s0] sm:$0xff]  ;;  %v322_v45 = vld [vmem:[#allocation11 + $0x38] sm:$0xff]  ;;  %v319_v48 = vld [vmem:[#allocation11 + $0x20] sm:$0xff] }
  0x52   :  { %v317_v43 = vld [vmem:[#allocation11 + $0x10] sm:$0xff]  ;;  %v4145_v47 = vpack.c.bf16 %v322_v45, %v320_v44  ;;  %v324_v50 = vld [vmem:[#allocation11 + $0x48] sm:$0xff]  ;;  %3255 = vmatprep.subr.bf16.mxu1 %v4141_v42  ;;  %v326_v51 = vld [vmem:[#allocation11 + $0x58] sm:$0xff] }
  0x53   :  { %v4143_v46 = vpack.c.bf16 %v317_v43, %v315_v41  ;;  %v321_v49 = vld [vmem:[#allocation11 + $0x30] sm:$0xff]  ;;  %v4152_v53 = vpack.c.bf16 %v326_v51, %v324_v50  ;;  %v323_v54 = vld [vmem:[#allocation11 + $0x40] sm:$0xff]  ;;  %v328_v56 = vld [vmem:[#allocation11 + $0x68] sm:$0xff] }
  0x54   :  { %3249 = vmatpush1.bf16.msra.mxu0 %v4100_v20  ;;  %v4149_v52 = vpack.c.bf16 %v321_v49, %v319_v48  ;;  %v325_v55 = vld [vmem:[#allocation11 + $0x50] sm:$0xff]  ;;  %v330_v57 = vld [vmem:[#allocation11 + $0x78] sm:$0xff]  ;;  %v327_v60 = vld [vmem:[#allocation11 + $0x60] sm:$0xff] }
  0x55   :  { %3251 = vmatprep.subr.bf16.mxu0 %v4103_v21  ;;  %3257 = vmatpush1.bf16.msra.mxu1 %v4143_v46  ;;  %v4155_v58 = vpack.c.bf16 %v325_v55, %v323_v54  ;;  %v4158_v59 = vpack.c.bf16 %v330_v57, %v328_v56  ;;  %v329_v61 = vld [vmem:[#allocation11 + $0x70] sm:$0xff]  ;;  %v300_v62 = vld [vmem:[#allocation10 + $0x8] sm:$0xff]  ;;  %v302_v63 = vld [vmem:[#allocation10 + $0x18] sm:$0xff] }
  0x56   :  { %3259 = vmatprep.subr.bf16.mxu1 %v4145_v47  ;;  %v4161_v1 = vpack.c.bf16 %v329_v61, %v327_v60  ;;  %v4164_v2 = vpack.c.bf16 %v302_v63, %v300_v62  ;;  %v299_v3 = vld [vmem:[#allocation10] sm:$0xff]  ;;  %v301_v5 = vld [vmem:[#allocation10 + $0x10] sm:$0xff]  ;;  %v304_v6 = vld [vmem:[#allocation10 + $0x28] sm:$0xff] }
  0x57   :  { %v306_v7 = vld [vmem:[#allocation10 + $0x38] sm:$0xff]  ;;  %v94_v10 = vld [vmem:[#allocation4] sm:$0xff]  ;;  %v4167_v11 = vpack.c.bf16 %v301_v5, %v299_v3  ;;  %v305_v16 = vld [vmem:[#allocation10 + $0x30] sm:$0xff] }
  0x58   :  { %3253 = vmatpush1.bf16.msra.mxu0 %v4106_v24  ;;  %v4170_v12 = vpack.c.bf16 %v306_v7, %v304_v6  ;;  %v303_v13 = vld [vmem:[#allocation10 + $0x20] sm:$0xff]  ;;  %v308_v17 = vld [vmem:[#allocation10 + $0x48] sm:$0xff]  ;;  %v310_v18 = vld [vmem:[#allocation10 + $0x58] sm:$0xff] }
  0x59   :  { %194 = vmatprep.subr.mxu0 %v4109_v25  ;;  %3261 = vmatpush1.bf16.msra.mxu1 %v4149_v52  ;;  %v4174_v19 = vpack.c.bf16 %v305_v16, %v303_v13  ;;  %v4178_v22 = vpack.c.bf16 %v310_v18, %v308_v17  ;;  %v307_v23 = vld [vmem:[#allocation10 + $0x40] sm:$0xff]  ;;  %v91_v54 = vld [vmem:[%s4616_s5] sm:$0x3]  ;;  %v95_v7 = vld [vmem:[#allocation5] sm:$0xff] }
  0x5a   :  { %3263 = vmatprep.subr.bf16.mxu1 %v4152_v53 }
  0x5b   :  { %3137 = vmatmul.mubr.msk.f32.vlgmr.msra.gmra.mrb[0].mxu0 %vm86_vm0, %v92_v26  ;;  %v309_v26 = vld [vmem:[#allocation10 + $0x50] sm:$0xff] }
  0x5c   :  { %195 = vmatpush1.msra.mxu0 %v4113_v27  ;;  %258 = vmatprep.mubr.f32.mxu0 %v3970_v0 }
  0x5d   :  { %3287 = vmatprep.subr.bf16.mxu0 %v4086_v4  ;;  %3265 = vmatpush1.bf16.msra.mxu1 %v4155_v58 }
  0x5e   :  { %3267 = vmatprep.subr.bf16.mxu1 %v4158_v59 }
  0x61   :  { %3269 = vmatpush1.bf16.msra.mxu1 %v4161_v1 }
  0x62   :  { %3271 = vmatprep.subr.bf16.mxu1 %v4164_v2 }
  0x63   :  { %3138 = vmatmul.mubr.msk.f32.vlgmr.msra.gmra.mrb[0].mxu0 %vm190_vm1, %v96_v28  ;;  %v312_v28 = vld [vmem:[#allocation10 + $0x68] sm:$0xff] }
  0x64   :  { %3289 = vmatpush1.bf16.msra.mxu0 %v4088_v8  ;;  %592 = vmatprep.mubr.f32.mxu0 %v3970_v0 }
  0x65   :  { %3291 = vmatprep.subr.bf16.mxu0 %v4090_v9  ;;  %3141 = vmatmul.mubr.msk.f32.vlgmr.msra.gmra.mrb[0].mxu1 %vm86_vm0, %v94_v10 }
  0x66   :  { %3273 = vmatpush1.bf16.msra.mxu1 %v4167_v11  ;;  %472 = vmatprep.mubr.f32.mxu1 %v3970_v0 }
  0x67   :  { %3275 = vmatprep.subr.bf16.mxu1 %v4170_v12 }
  0x68   :  { %3293 = vmatpush1.bf16.msra.mxu0 %v4094_v14 }
  0x69   :  { %3295 = vmatprep.subr.bf16.mxu0 %v4097_v15 }
  0x6a   :  { %3277 = vmatpush1.bf16.msra.mxu1 %v4174_v19 }
  0x6b   :  { %3279 = vmatprep.subr.bf16.mxu1 %v4178_v22 }
  0x6c   :  { %3297 = vmatpush1.bf16.msra.mxu0 %v4100_v20 }
  0x6d   :  { %3299 = vmatprep.subr.bf16.mxu0 %v4103_v21 }
  0x70   :  { %3301 = vmatpush1.bf16.msra.mxu0 %v4106_v24 }
  0x71   :  { %602 = vmatprep.subr.mxu0 %v4109_v25 }
 0x136   :  { %v260_v29 = vpop.f32.mrb[0].mxu0 }
 0x137   :  { %v4132_v30 = vpop.f32.mrb[1].mxu0  ;;  %v3139_v33 = vmul.f32 -1.442695, %v260_v29  ;;  %v314_v29 = vld [vmem:[#allocation10 + $0x78] sm:$0xff] }
 0x138   :  { %3676 = vtanh.f32 %v4132_v30  ;;  %v3140_v43 = vmul.f32 -1.442695, %v4132_v30  ;;  %v3145_v30 = vld [vmem:[%s4611_s0 + $0x8] sm:$0xff] }
 0x139   :  { %3678 = vpow2.f32 %v3139_v33  ;;  %v311_v33 = vld [vmem:[#allocation10 + $0x60] sm:$0xff] }
 0x142   :  { %v3677_v31 = vpop.eup %3676 }
 0x143   :  { %284 = vrot.lane.b32.xlu0 %v3677_v31, %s3971_s16  ;;  %v3679_v34 = vpop.eup %3678  ;;  %v4181_v31 = vpack.c.bf16 %v309_v26, %v307_v23 }
 0x144   :  { %v271_v35 = vadd.f32 1.0, %v3679_v34  ;;  %v313_v34 = vld [vmem:[#allocation10 + $0x70] sm:$0xff] }
 0x145   :  { %3281 = vmatpush1.bf16.msra.mxu1 %v4181_v31 }
 0x146   :  { %3680 = vrcp.f32 %v271_v35  ;;  %v4187_v35 = vpack.c.bf16 %v313_v34, %v311_v33 }
 0x147   :  { %279 = vrot.lane.b32.xlu0 %v93_v32, %s3971_s16  ;;  %v4184_v32 = vpack.c.bf16 %v314_v29, %v312_v28 }
 0x149   :  { %3283 = vmatprep.subr.bf16.mxu1 %v4184_v32 }
 0x14a   :  { %3285 = vmatpush1.bf16.msra.mxu1 %v4187_v35 }
 0x14b   :  { %3303 = vmatprep.subr.bf16.mxu1 %v4141_v42 }
 0x150   :  { %v4137_v36 = vpop.eup %3680 }
 0x1b5   :  { %v285_v37 = vpop.permute.xlu0 %284 }
 0x1b6   :  { %v287_v38 = vmul.f32 %v4137_v36, %v285_v37 }
 0x1b8   :  { %289 = vrot.lane.b32.xlu1 %v287_v38, %s3971_s16 }
 0x1b9   :  { %v280_v37 = vpop.permute.xlu0 %279 }
 0x1ba   :  { %v282_v38 = vmul.f32 %v4137_v36, %v280_v37  ;;  %v480_v36 = vlaneseq }
 0x1bc   :  { %v481_v51 = vshrl.u32 %v480_v36, 7 }
 0x1be   :  { %v482_v55 = vsub.s32 0, %v481_v51  ;;  %v486_v57 = vsub.s32 1, %v481_v51 }
 0x1c0   :  { %v4228_v56 = vrot.slane %v91_v54, %v482_v55  ;;  %v4230_v60 = vrot.slane %v91_v54, %v486_v57 }
 0x22a   :  { %v290_v39 = vpop.permute.xlu1 %289 }
 0x22b   :  { %v4193_v40 = vadd.f32 %v290_v39, %v282_v38 }
 0x22d   :  { %3682 = vtanh.f32 %v4193_v40 }
 0x22e   :  { %3684 = vpow2.f32 %v3140_v43 }
 0x237   :  { %v3683_v41 = vpop.eup %3682 }
 0x238   :  { %295 = vrot.lane.b32.xlu1 %v3683_v41, %s3971_s16  ;;  %v3685_v44 = vpop.eup %3684 }
 0x239   :  { %v272_v45 = vadd.f32 1.0, %v3685_v44 }
 0x23b   :  { %3686 = vrcp.f32 %v272_v45 }
 0x245   :  { %v3687_v48 = vpop.eup %3686 }
 0x2aa   :  { %v296_v49 = vpop.permute.xlu1 %295 }
 0x2ab   :  { %v298_v50 = vmul.f32 %v3687_v48, %v296_v49 }
 0x2ad   :  { %3142 = vmatmul.mubr.msk.f32.vlgmr.msra.gmra.mrb[0].mxu1 %vm86_vm0, %v298_v50  ;;  %3146 = vmatmul.mubr.msk.f32.vlgmr.msra.gmra.mrb[2].mxu0 %vm86_vm0, %v298_v50 }
 0x2ae   :  { %603 = vmatpush1.msra.mxu0 %v4113_v27  ;;  %666 = vmatprep.mubr.f32.mxu0 %v3970_v0 }
 0x2af   :  { %3305 = vmatpush1.bf16.msra.mxu1 %v4143_v46  ;;  %3335 = vmatprep.subr.bf16.mxu0 %v4086_v4 }
 0x2b0   :  { %3307 = vmatprep.subr.bf16.mxu1 %v4145_v47  ;;  %770 = vmatprep.mubr.f32.mxu1 %v3970_v0 }
 0x2b3   :  { %3309 = vmatpush1.bf16.msra.mxu1 %v4149_v52 }
 0x2b4   :  { %3311 = vmatprep.subr.bf16.mxu1 %v4152_v53 }
 0x2b5   :  { %3147 = vmatmul.mubr.msk.f32.vlgmr.msra.gmra.mrb[2].mxu0 %vm190_vm1, %v3145_v30 }
 0x2b6   :  { %3337 = vmatpush1.bf16.msra.mxu0 %v4088_v8  ;;  %949 = vmatprep.mubr.f32.mxu0 %v3970_v0 }
 0x2b7   :  { %3313 = vmatpush1.bf16.msra.mxu1 %v4155_v58  ;;  %3339 = vmatprep.subr.bf16.mxu0 %v4090_v9 }
 0x2b8   :  { %3315 = vmatprep.subr.bf16.mxu1 %v4158_v59 }
 0x2ba   :  { %3341 = vmatpush1.bf16.msra.mxu0 %v4094_v14 }
 0x2bb   :  { %3317 = vmatpush1.bf16.msra.mxu1 %v4161_v1  ;;  %3343 = vmatprep.subr.bf16.mxu0 %v4097_v15 }
 0x2bc   :  { %3319 = vmatprep.subr.bf16.mxu1 %v4164_v2 }
 0x2be   :  { %3345 = vmatpush1.bf16.msra.mxu0 %v4100_v20 }
 0x2bf   :  { %3347 = vmatprep.subr.bf16.mxu0 %v4103_v21 }
 0x2c2   :  { %3349 = vmatpush1.bf16.msra.mxu0 %v4106_v24 }
 0x2c3   :  { %959 = vmatprep.subr.mxu0 %v4109_v25 }
 0x380   :  { %v474_v61 = vpop.f32.mrb[0].mxu1 }
 0x381   :  { %v476_v62 = vpop.f32.mrb[1].mxu1  ;;  %v490_v13 = vadd.f32 %v4228_v56, %v474_v61 }
 0x382   :  { %v491_v63 = vadd.f32 %v4230_v60, %v476_v62 }
 0x383   :  { %v3143_v16 = vmul.f32 -1.442695, %v490_v13 }
 0x384   :  { %3688 = vtanh.f32 %v491_v63  ;;  %v3144_v51 = vmul.f32 -1.442695, %v491_v63 }
 0x388   :  { %v668_v3 = vpop.f32.mrb[2].mxu0 }
 0x389   :  { %v670_v5 = vpop.f32.mrb[3].mxu0  ;;  %v3148_v17 = vmul.f32 -1.442695, %v668_v3 }
 0x38a   :  { %3690 = vtanh.f32 %v670_v5  ;;  %v3149_v54 = vmul.f32 -1.442695, %v670_v5 }
 0x38b   :  { %3692 = vpow2.f32 %v3143_v16 }
 0x38c   :  { %3694 = vpow2.f32 %v3148_v17 }
 0x38e   :  { %v3689_v6 = vpop.eup %3688 }
 0x38f   :  { %511 = vrot.lane.b32.xlu0 %v3689_v6, %s3971_s16 }
 0x393   :  { %506 = vrot.lane.b32.xlu0 %v95_v7, %s3971_s16 }
 0x394   :  { %v3691_v10 = vpop.eup %3690 }
 0x395   :  { %688 = vrot.lane.b32.xlu1 %v3691_v10, %s3971_s16  ;;  %v3693_v18 = vpop.eup %3692  ;;  %v3154_v10 = vld [vmem:[%s4611_s0 + $0x10] sm:$0xff] }
 0x396   :  { %v498_v23 = vadd.f32 1.0, %v3693_v18  ;;  %v3695_v26 = vpop.eup %3694 }
 0x397   :  { %v679_v28 = vadd.f32 1.0, %v3695_v26 }
 0x398   :  { %3696 = vrcp.f32 %v498_v23 }
 0x399   :  { %3698 = vrcp.f32 %v679_v28 }
 0x3a2   :  { %v3697_v29 = vpop.eup %3696 }
 0x3a3   :  { %v3699_v37 = vpop.eup %3698 }
 0x3a4   :  { %v686_v48 = vmul.f32 %v3699_v37, %v4193_v40 }
 0x401   :  { %v512_v33 = vpop.permute.xlu0 %511 }
 0x402   :  { %v514_v34 = vmul.f32 %v3697_v29, %v512_v33 }
 0x404   :  { %516 = vrot.lane.b32.xlu1 %v514_v34, %s3971_s16 }
 0x405   :  { %v507_v41 = vpop.permute.xlu0 %506 }
 0x406   :  { %v509_v43 = vmul.f32 %v3697_v29, %v507_v41 }
 0x407   :  { %v689_v38 = vpop.permute.xlu1 %688 }
 0x408   :  { %v691_v39 = vmul.f32 %v3699_v37, %v689_v38 }
 0x40a   :  { %693 = vrot.lane.b32.xlu0 %v691_v39, %s3971_s16 }
 0x476   :  { %v517_v44 = vpop.permute.xlu1 %516 }
 0x477   :  { %v4239_v45 = vadd.f32 %v517_v44, %v509_v43 }
 0x479   :  { %3700 = vtanh.f32 %v4239_v45 }
 0x47c   :  { %v694_v49 = vpop.permute.xlu0 %693 }
 0x47d   :  { %v4243_v50 = vadd.f32 %v694_v49, %v686_v48 }
 0x47f   :  { %3702 = vtanh.f32 %v4243_v50 }
 0x480   :  { %3704 = vpow2.f32 %v3144_v51 }
 0x481   :  { %3706 = vpow2.f32 %v3149_v54 }
 0x483   :  { %v3701_v30 = vpop.eup %3700 }
 0x484   :  { %522 = vrot.lane.b32.xlu1 %v3701_v30, %s3971_s16 }
 0x489   :  { %v3703_v36 = vpop.eup %3702 }
 0x48a   :  { %699 = vrot.lane.b32.xlu0 %v3703_v36, %s3971_s16  ;;  %v3705_v55 = vpop.eup %3704 }
 0x48b   :  { %v499_v57 = vadd.f32 1.0, %v3705_v55  ;;  %v3707_v61 = vpop.eup %3706 }
 0x48c   :  { %v680_v40 = vadd.f32 1.0, %v3707_v61 }
 0x48d   :  { %3708 = vrcp.f32 %v499_v57 }
 0x48e   :  { %3710 = vrcp.f32 %v680_v40 }
 0x497   :  { %v3709_v62 = vpop.eup %3708 }
 0x498   :  { %v3711_v63 = vpop.eup %3710 }
 0x4f6   :  { %v523_v3 = vpop.permute.xlu1 %522 }
 0x4f7   :  { %v525_v6 = vmul.f32 %v3709_v62, %v523_v3 }
 0x4f9   :  { %3150 = vmatmul.mubr.msk.f32.vlgmr.msra.gmra.mrb[2].mxu1 %vm86_vm0, %v525_v6 }
 0x4fa   :  { %3321 = vmatpush1.bf16.msra.mxu1 %v4167_v11  ;;  %844 = vmatprep.mubr.f32.mxu1 %v3970_v0 }
 0x4fb   :  { %3323 = vmatprep.subr.bf16.mxu1 %v4170_v12 }
 0x4fc   :  { %v700_v5 = vpop.permute.xlu0 %699 }
 0x4fd   :  { %v702_v7 = vmul.f32 %v3711_v63, %v700_v5 }
 0x4fe   :  { %3325 = vmatpush1.bf16.msra.mxu1 %v4174_v19 }
 0x4ff   :  { %3155 = vmatmul.mubr.msk.f32.vlgmr.msra.gmra.mrb[4].mxu0 %vm86_vm0, %v702_v7  ;;  %3327 = vmatprep.subr.bf16.mxu1 %v4178_v22 }
 0x500   :  { %960 = vmatpush1.msra.mxu0 %v4113_v27  ;;  %1023 = vmatprep.mubr.f32.mxu0 %v3970_v0 }
 0x501   :  { %3351 = vmatprep.subr.bf16.mxu0 %v4141_v42 }
 0x502   :  { %3329 = vmatpush1.bf16.msra.mxu1 %v4181_v31 }
 0x503   :  { %3331 = vmatprep.subr.bf16.mxu1 %v4184_v32 }
 0x506   :  { %3333 = vmatpush1.bf16.msra.mxu1 %v4187_v35 }
 0x507   :  { %3156 = vmatmul.mubr.msk.f32.vlgmr.msra.gmra.mrb[4].mxu0 %vm190_vm1, %v3154_v10  ;;  %3383 = vmatprep.subr.bf16.mxu1 %v4086_v4 }
 0x508   :  { %3353 = vmatpush1.bf16.msra.mxu0 %v4143_v46  ;;  %1127 = vmatprep.mubr.f32.mxu0 %v3970_v0 }
 0x509   :  { %3151 = vmatmul.mubr.msk.f32.vlgmr.msra.gmra.mrb[2].mxu1 %vm86_vm0, %v702_v7  ;;  %3355 = vmatprep.subr.bf16.mxu0 %v4145_v47 }
 0x50a   :  { %3385 = vmatpush1.bf16.msra.mxu1 %v4088_v8  ;;  %1306 = vmatprep.mubr.f32.mxu1 %v3970_v0 }
 0x50b   :  { %3387 = vmatprep.subr.bf16.mxu1 %v4090_v9 }
 0x50c   :  { %3357 = vmatpush1.bf16.msra.mxu0 %v4149_v52 }
 0x50d   :  { %3359 = vmatprep.subr.bf16.mxu0 %v4152_v53 }
 0x50e   :  { %3389 = vmatpush1.bf16.msra.mxu1 %v4094_v14 }
 0x50f   :  { %3391 = vmatprep.subr.bf16.mxu1 %v4097_v15 }
 0x510   :  { %3361 = vmatpush1.bf16.msra.mxu0 %v4155_v58 }
 0x511   :  { %3363 = vmatprep.subr.bf16.mxu0 %v4158_v59 }
 0x512   :  { %3393 = vmatpush1.bf16.msra.mxu1 %v4100_v20 }
 0x513   :  { %3395 = vmatprep.subr.bf16.mxu1 %v4103_v21 }
 0x514   :  { %3365 = vmatpush1.bf16.msra.mxu0 %v4161_v1 }
 0x515   :  { %3367 = vmatprep.subr.bf16.mxu0 %v4164_v2 }
 0x516   :  { %3397 = vmatpush1.bf16.msra.mxu1 %v4106_v24 }
 0x517   :  { %3399 = vmatprep.subr.bf16.mxu1 %v4141_v42 }
 0x5da   :  { %v1025_v13 = vpop.f32.mrb[4].mxu0 }
 0x5db   :  { %v1027_v16 = vpop.f32.mrb[5].mxu0  ;;  %v3157_v29 = vmul.f32 -1.442695, %v1025_v13 }
 0x5dc   :  { %v846_v17 = vpop.f32.mrb[2].mxu1  ;;  %3712 = vtanh.f32 %v1027_v16  ;;  %v3158_v6 = vmul.f32 -1.442695, %v1027_v16 }
 0x5dd   :  { %v848_v18 = vpop.f32.mrb[3].mxu1  ;;  %v851_v33 = vadd.f32 %v846_v17, %v4228_v56 }
 0x5de   :  { %v852_v23 = vadd.f32 %v848_v18, %v4230_v60 }
 0x5df   :  { %v3152_v34 = vmul.f32 -1.442695, %v851_v33 }
 0x5e0   :  { %3714 = vtanh.f32 %v852_v23 }
 0x5e1   :  { %3716 = vpow2.f32 %v3157_v29 }
 0x5e2   :  { %3718 = vpow2.f32 %v3152_v34 }
 0x5e6   :  { %v3713_v26 = vpop.eup %3712 }
 0x5e7   :  { %1045 = vrot.lane.b32.xlu0 %v3713_v26, %s3971_s16 }
 0x5ea   :  { %v3715_v28 = vpop.eup %3714 }
 0x5eb   :  { %868 = vrot.lane.b32.xlu1 %v3715_v28, %s3971_s16  ;;  %v3717_v37 = vpop.eup %3716 }
 0x5ec   :  { %v1036_v38 = vadd.f32 1.0, %v3717_v37  ;;  %v3719_v39 = vpop.eup %3718 }
 0x5ed   :  { %v859_v41 = vadd.f32 1.0, %v3719_v39 }
 0x5ee   :  { %3720 = vrcp.f32 %v1036_v38 }
 0x5ef   :  { %3722 = vrcp.f32 %v859_v41 }
 0x5f8   :  { %v3721_v43 = vpop.eup %3720 }
 0x5f9   :  { %v3723_v49 = vpop.eup %3722  ;;  %v1043_v51 = vmul.f32 %v3721_v43, %v4243_v50  ;;  %v3153_v50 = vmul.f32 -1.442695, %v852_v23  ;;  %v3163_v23 = vld [vmem:[%s4611_s0 + $0x18] sm:$0xff] }
 0x5fa   :  { %v866_v57 = vmul.f32 %v3723_v49, %v4239_v45 }
 0x659   :  { %v1046_v44 = vpop.permute.xlu0 %1045 }
 0x65a   :  { %v1048_v48 = vmul.f32 %v3721_v43, %v1046_v44 }
 0x65c   :  { %1050 = vrot.lane.b32.xlu0 %v1048_v48, %s3971_s16 }
 0x65d   :  { %v869_v30 = vpop.permute.xlu1 %868 }
 0x65e   :  { %v871_v36 = vmul.f32 %v3723_v49, %v869_v30 }
 0x660   :  { %873 = vrot.lane.b32.xlu1 %v871_v36, %s3971_s16 }
 0x6ce   :  { %v1051_v54 = vpop.permute.xlu0 %1050 }
 0x6cf   :  { %v4292_v55 = vadd.f32 %v1051_v54, %v1043_v51 }
 0x6d1   :  { %3724 = vtanh.f32 %v4292_v55 }
 0x6d2   :  { %v874_v61 = vpop.permute.xlu1 %873 }
 0x6d3   :  { %v4296_v40 = vadd.f32 %v874_v61, %v866_v57 }
 0x6d5   :  { %3726 = vtanh.f32 %v4296_v40 }
 0x6d6   :  { %3728 = vpow2.f32 %v3158_v6 }
 0x6d7   :  { %3730 = vpow2.f32 %v3153_v50 }
 0x6db   :  { %v3725_v62 = vpop.eup %3724 }
 0x6dc   :  { %1056 = vrot.lane.b32.xlu0 %v3725_v62, %s3971_s16 }
 0x6df   :  { %v3727_v3 = vpop.eup %3726 }
 0x6e0   :  { %879 = vrot.lane.b32.xlu1 %v3727_v3, %s3971_s16  ;;  %v3729_v63 = vpop.eup %3728 }
 0x6e1   :  { %v1037_v5 = vadd.f32 1.0, %v3729_v63  ;;  %v3731_v7 = vpop.eup %3730 }
 0x6e2   :  { %v860_v45 = vadd.f32 1.0, %v3731_v7 }
 0x6e3   :  { %3732 = vrcp.f32 %v1037_v5 }
 0x6e4   :  { %3734 = vrcp.f32 %v860_v45 }
 0x6ed   :  { %v3733_v10 = vpop.eup %3732 }
 0x6ee   :  { %v3735_v18 = vpop.eup %3734 }
 0x74e   :  { %v1057_v13 = vpop.permute.xlu0 %1056 }
 0x74f   :  { %v1059_v17 = vmul.f32 %v3733_v10, %v1057_v13 }
 0x751   :  { %3164 = vmatmul.mubr.msk.f32.vlgmr.msra.gmra.mrb[4].mxu1 %vm86_vm0, %v1059_v17 }
 0x752   :  { %v880_v26 = vpop.permute.xlu1 %879  ;;  %3401 = vmatpush1.bf16.msra.mxu1 %v4143_v46  ;;  %1484 = vmatprep.mubr.f32.mxu1 %v3970_v0 }
 0x753   :  { %v882_v16 = vmul.f32 %v3735_v18, %v880_v26  ;;  %3403 = vmatprep.subr.bf16.mxu1 %v4145_v47 }
 0x755   :  { %3159 = vmatmul.mubr.msk.f32.vlgmr.msra.gmra.mrb[6].mxu0 %vm86_vm0, %v882_v16 }
 0x756   :  { %3369 = vmatpush1.bf16.msra.mxu0 %v4167_v11  ;;  %1201 = vmatprep.mubr.f32.mxu0 %v3970_v0 }
 0x757   :  { %3371 = vmatprep.subr.bf16.mxu0 %v4170_v12  ;;  %3405 = vmatpush1.bf16.msra.mxu1 %v4149_v52 }
 0x758   :  { %3407 = vmatprep.subr.bf16.mxu1 %v4152_v53 }
 0x75a   :  { %3373 = vmatpush1.bf16.msra.mxu0 %v4174_v19 }
 0x75b   :  { %3375 = vmatprep.subr.bf16.mxu0 %v4178_v22  ;;  %3409 = vmatpush1.bf16.msra.mxu1 %v4155_v58 }
 0x75c   :  { %3411 = vmatprep.subr.bf16.mxu1 %v4158_v59 }
 0x75e   :  { %3377 = vmatpush1.bf16.msra.mxu0 %v4181_v31 }
 0x75f   :  { %3379 = vmatprep.subr.bf16.mxu0 %v4184_v32  ;;  %3413 = vmatpush1.bf16.msra.mxu1 %v4161_v1 }
 0x760   :  { %3415 = vmatprep.subr.bf16.mxu1 %v4164_v2 }
 0x762   :  { %3381 = vmatpush1.bf16.msra.mxu0 %v4187_v35 }
 0x763   :  { %1316 = vmatprep.subr.mxu0 %v4109_v25 }
 0x765   :  { %3160 = vmatmul.mubr.msk.f32.vlgmr.msra.gmra.mrb[6].mxu0 %vm86_vm0, %v1059_v17 }
 0x766   :  { %1317 = vmatpush1.msra.mxu0 %v4113_v27  ;;  %1380 = vmatprep.mubr.f32.mxu0 %v3970_v0 }
 0x767   :  { %3431 = vmatprep.subr.bf16.mxu0 %v4086_v4 }
 0x769   :  { %3165 = vmatmul.mubr.msk.f32.vlgmr.msra.gmra.mrb[8].mxu0 %vm190_vm1, %v3163_v23 }
 0x76a   :  { %3433 = vmatpush1.bf16.msra.mxu0 %v4088_v8  ;;  %1663 = vmatprep.mubr.f32.mxu0 %v3970_v0 }
 0x76b   :  { %3435 = vmatprep.subr.bf16.mxu0 %v4090_v9 }
 0x76e   :  { %3437 = vmatpush1.bf16.msra.mxu0 %v4094_v14 }
 0x76f   :  { %3439 = vmatprep.subr.bf16.mxu0 %v4097_v15 }
 0x772   :  { %3441 = vmatpush1.bf16.msra.mxu0 %v4100_v20 }
 0x773   :  { %3443 = vmatprep.subr.bf16.mxu0 %v4103_v21 }
 0x776   :  { %3445 = vmatpush1.bf16.msra.mxu0 %v4106_v24 }
 0x777   :  { %1673 = vmatprep.subr.mxu0 %v4109_v25 }
 0x824   :  { %v1308_v28 = vpop.f32.mrb[4].mxu1 }
 0x825   :  { %v1310_v29 = vpop.f32.mrb[5].mxu1 }
 0x838   :  { %v1203_v33 = vpop.f32.mrb[6].mxu0 }
 0x839   :  { %v1205_v34 = vpop.f32.mrb[7].mxu0  ;;  %v1208_v49 = vadd.f32 %v1203_v33, %v4228_v56 }
 0x83a   :  { %v1209_v37 = vadd.f32 %v1205_v34, %v4230_v60 }
 0x83b   :  { %v3161_v30 = vmul.f32 -1.442695, %v1208_v49 }
 0x83c   :  { %3736 = vtanh.f32 %v1209_v37  ;;  %v1382_v38 = vpop.f32.mrb[8].mxu0  ;;  %v3162_v23 = vmul.f32 -1.442695, %v1209_v37 }
 0x83d   :  { %v1383_v39 = vadd.f32 %v1382_v38, %v1308_v28  ;;  %v1384_v41 = vpop.f32.mrb[9].mxu0 }
 0x83e   :  { %v1385_v43 = vadd.f32 %v1384_v41, %v1310_v29 }
 0x83f   :  { %v3166_v36 = vmul.f32 -1.442695, %v1383_v39 }
 0x840   :  { %3738 = vtanh.f32 %v1385_v43 }
 0x841   :  { %3740 = vpow2.f32 %v3161_v30 }
 0x842   :  { %3742 = vpow2.f32 %v3166_v36 }
 0x846   :  { %v3737_v44 = vpop.eup %3736 }
 0x847   :  { %1225 = vrot.lane.b32.xlu1 %v3737_v44, %s3971_s16 }
 0x84a   :  { %v3739_v48 = vpop.eup %3738 }
 0x84b   :  { %1402 = vrot.lane.b32.xlu0 %v3739_v48, %s3971_s16  ;;  %v3741_v51 = vpop.eup %3740 }
 0x84c   :  { %v1216_v54 = vadd.f32 1.0, %v3741_v51  ;;  %v3743_v57 = vpop.eup %3742 }
 0x84d   :  { %v1393_v61 = vadd.f32 1.0, %v3743_v57 }
 0x84e   :  { %3744 = vrcp.f32 %v1216_v54 }
 0x84f   :  { %3746 = vrcp.f32 %v1393_v61 }
 0x858   :  { %v3745_v62 = vpop.eup %3744 }
 0x859   :  { %v3747_v50 = vpop.eup %3746  ;;  %v1223_v7 = vmul.f32 %v3745_v62, %v4296_v40  ;;  %v3167_v40 = vmul.f32 -1.442695, %v1385_v43  ;;  %v3172_v43 = vld [vmem:[%s4611_s0 + $0x20] sm:$0xff] }
 0x85a   :  { %v1400_v13 = vmul.f32 %v3747_v50, %v4292_v55 }
 0x8b9   :  { %v1226_v3 = vpop.permute.xlu1 %1225 }
 0x8ba   :  { %v1228_v6 = vmul.f32 %v3745_v62, %v1226_v3 }
 0x8bc   :  { %1230 = vrot.lane.b32.xlu1 %v1228_v6, %s3971_s16 }
 0x8bd   :  { %v1403_v63 = vpop.permute.xlu0 %1402 }
 0x8be   :  { %v1405_v5 = vmul.f32 %v3747_v50, %v1403_v63 }
 0x8c0   :  { %1407 = vrot.lane.b32.xlu0 %v1405_v5, %s3971_s16 }
 0x92e   :  { %v1231_v45 = vpop.permute.xlu1 %1230 }
 0x92f   :  { %v4345_v10 = vadd.f32 %v1231_v45, %v1223_v7 }
 0x931   :  { %3748 = vtanh.f32 %v4345_v10 }
 0x932   :  { %v1408_v17 = vpop.permute.xlu0 %1407 }
 0x933   :  { %v4349_v18 = vadd.f32 %v1408_v17, %v1400_v13 }
 0x935   :  { %3750 = vtanh.f32 %v4349_v18 }
 0x936   :  { %3752 = vpow2.f32 %v3162_v23 }
 0x937   :  { %3754 = vpow2.f32 %v3167_v40 }
 0x93b   :  { %v3749_v26 = vpop.eup %3748 }
 0x93c   :  { %1236 = vrot.lane.b32.xlu1 %v3749_v26, %s3971_s16 }
 0x93f   :  { %v3751_v16 = vpop.eup %3750 }
 0x940   :  { %1413 = vrot.lane.b32.xlu0 %v3751_v16, %s3971_s16  ;;  %v3753_v28 = vpop.eup %3752 }
 0x941   :  { %v1217_v29 = vadd.f32 1.0, %v3753_v28  ;;  %v3755_v33 = vpop.eup %3754 }
 0x942   :  { %v1394_v55 = vadd.f32 1.0, %v3755_v33 }
 0x943   :  { %3756 = vrcp.f32 %v1217_v29 }
 0x944   :  { %3758 = vrcp.f32 %v1394_v55 }
 0x94d   :  { %v3757_v34 = vpop.eup %3756 }
 0x94e   :  { %v3759_v41 = vpop.eup %3758 }
 0x9ae   :  { %v1237_v38 = vpop.permute.xlu1 %1236 }
 0x9af   :  { %v1239_v39 = vmul.f32 %v3757_v34, %v1237_v38 }
 0x9b1   :  { %3168 = vmatmul.mubr.msk.f32.vlgmr.msra.gmra.mrb[6].mxu1 %vm86_vm0, %v1239_v39 }
 0x9b2   :  { %3417 = vmatpush1.bf16.msra.mxu1 %v4167_v11  ;;  %v1414_v44 = vpop.permute.xlu0 %1413  ;;  %1558 = vmatprep.mubr.f32.mxu1 %v3970_v0 }
 0x9b3   :  { %v1416_v37 = vmul.f32 %v3759_v41, %v1414_v44  ;;  %3419 = vmatprep.subr.bf16.mxu1 %v4170_v12 }
 0x9b5   :  { %3173 = vmatmul.mubr.msk.f32.vlgmr.msra.gmra.mrb[10].mxu0 %vm86_vm0, %v1416_v37 }
 0x9b6   :  { %3421 = vmatpush1.bf16.msra.mxu1 %v4174_v19  ;;  %1674 = vmatpush1.msra.mxu0 %v4113_v27 }
 0x9b7   :  { %3423 = vmatprep.subr.bf16.mxu1 %v4178_v22  ;;  %1737 = vmatprep.mubr.f32.mxu0 %v3970_v0 }
 0x9b8   :  { %3447 = vmatprep.subr.bf16.mxu0 %v4141_v42 }
 0x9ba   :  { %3425 = vmatpush1.bf16.msra.mxu1 %v4181_v31 }
 0x9bb   :  { %3427 = vmatprep.subr.bf16.mxu1 %v4184_v32 }
 0x9bd   :  { %3174 = vmatmul.mubr.msk.f32.vlgmr.msra.gmra.mrb[10].mxu0 %vm190_vm1, %v3172_v43 }
 0x9be   :  { %3429 = vmatpush1.bf16.msra.mxu1 %v4187_v35  ;;  %3449 = vmatpush1.bf16.msra.mxu0 %v4143_v46 }
 0x9bf   :  { %3479 = vmatprep.subr.bf16.mxu1 %v4086_v4  ;;  %3451 = vmatprep.subr.bf16.mxu0 %v4145_v47 }
 0x9c0   :  { %1841 = vmatprep.mubr.f32.mxu0 %v3970_v0 }
 0x9c1   :  { %3169 = vmatmul.mubr.msk.f32.vlgmr.msra.gmra.mrb[6].mxu1 %vm86_vm0, %v1416_v37 }
 0x9c2   :  { %3481 = vmatpush1.bf16.msra.mxu1 %v4088_v8  ;;  %3453 = vmatpush1.bf16.msra.mxu0 %v4149_v52 }
 0x9c3   :  { %3483 = vmatprep.subr.bf16.mxu1 %v4090_v9  ;;  %3455 = vmatprep.subr.bf16.mxu0 %v4152_v53 }
 0x9c4   :  { %2020 = vmatprep.mubr.f32.mxu1 %v3970_v0 }
 0x9c6   :  { %3485 = vmatpush1.bf16.msra.mxu1 %v4094_v14  ;;  %3457 = vmatpush1.bf16.msra.mxu0 %v4155_v58 }
 0x9c7   :  { %3487 = vmatprep.subr.bf16.mxu1 %v4097_v15  ;;  %3459 = vmatprep.subr.bf16.mxu0 %v4158_v59 }
 0x9ca   :  { %3489 = vmatpush1.bf16.msra.mxu1 %v4100_v20  ;;  %3461 = vmatpush1.bf16.msra.mxu0 %v4161_v1 }
 0x9cb   :  { %3491 = vmatprep.subr.bf16.mxu1 %v4103_v21  ;;  %3463 = vmatprep.subr.bf16.mxu0 %v4164_v2 }
 0x9ce   :  { %3493 = vmatpush1.bf16.msra.mxu1 %v4106_v24 }
 0x9cf   :  { %2030 = vmatprep.subr.mxu1 %v4109_v25 }
 0xa90   :  { %v1739_v48 = vpop.f32.mrb[10].mxu0 }
 0xa91   :  { %v1741_v49 = vpop.f32.mrb[11].mxu0  ;;  %v3175_v61 = vmul.f32 -1.442695, %v1739_v48 }
 0xa92   :  { %3760 = vtanh.f32 %v1741_v49  ;;  %v3176_v38 = vmul.f32 -1.442695, %v1741_v49 }
 0xa94   :  { %v1560_v30 = vpop.f32.mrb[6].mxu1 }
 0xa95   :  { %v1562_v36 = vpop.f32.mrb[7].mxu1  ;;  %v1565_v62 = vadd.f32 %v1560_v30, %v4228_v56 }
 0xa96   :  { %v1566_v51 = vadd.f32 %v1562_v36, %v4230_v60 }
 0xa97   :  { %v3170_v3 = vmul.f32 -1.442695, %v1565_v62 }
 0xa98   :  { %3762 = vtanh.f32 %v1566_v51 }
 0xa99   :  { %3764 = vpow2.f32 %v3175_v61 }
 0xa9a   :  { %3766 = vpow2.f32 %v3170_v3 }
 0xa9c   :  { %v3761_v54 = vpop.eup %3760 }
 0xa9d   :  { %1759 = vrot.lane.b32.xlu0 %v3761_v54, %s3971_s16 }
 0xaa2   :  { %v3763_v57 = vpop.eup %3762 }
 0xaa3   :  { %1582 = vrot.lane.b32.xlu1 %v3763_v57, %s3971_s16  ;;  %v3765_v25 = vpop.eup %3764 }
 0xaa4   :  { %v1750_v6 = vadd.f32 1.0, %v3765_v25  ;;  %v3767_v50 = vpop.eup %3766 }
 0xaa5   :  { %v1573_v63 = vadd.f32 1.0, %v3767_v50 }
 0xaa6   :  { %3768 = vrcp.f32 %v1750_v6 }
 0xaa7   :  { %3770 = vrcp.f32 %v1573_v63 }
 0xab0   :  { %v3769_v5 = vpop.eup %3768 }
 0xab1   :  { %v3771_v13 = vpop.eup %3770  ;;  %v1757_v16 = vmul.f32 %v3769_v5, %v4349_v18  ;;  %v3171_v18 = vmul.f32 -1.442695, %v1566_v51  ;;  %v3181_v51 = vld [vmem:[%s4611_s0 + $0x28] sm:$0xff] }
 0xab2   :  { %v1580_v28 = vmul.f32 %v3771_v13, %v4345_v10 }
 0xb0f   :  { %v1760_v7 = vpop.permute.xlu0 %1759 }
 0xb10   :  { %v1762_v45 = vmul.f32 %v3769_v5, %v1760_v7 }
 0xb12   :  { %1764 = vrot.lane.b32.xlu0 %v1762_v45, %s3971_s16 }
 0xb15   :  { %v1583_v17 = vpop.permute.xlu1 %1582 }
 0xb16   :  { %v1585_v26 = vmul.f32 %v3771_v13, %v1583_v17 }
 0xb18   :  { %1587 = vrot.lane.b32.xlu1 %v1585_v26, %s3971_s16 }
 0xb84   :  { %v1765_v23 = vpop.permute.xlu0 %1764 }
 0xb85   :  { %v4398_v40 = vadd.f32 %v1765_v23, %v1757_v16 }
 0xb87   :  { %3772 = vtanh.f32 %v4398_v40 }
 0xb8a   :  { %v1588_v29 = vpop.permute.xlu1 %1587 }
 0xb8b   :  { %v4402_v33 = vadd.f32 %v1588_v29, %v1580_v28 }
 0xb8d   :  { %3774 = vtanh.f32 %v4402_v33 }
 0xb8e   :  { %3776 = vpow2.f32 %v3176_v38 }
 0xb8f   :  { %3778 = vpow2.f32 %v3171_v18 }
 0xb91   :  { %v3773_v55 = vpop.eup %3772 }
 0xb92   :  { %1770 = vrot.lane.b32.xlu0 %v3773_v55, %s3971_s16 }
 0xb97   :  { %v3775_v34 = vpop.eup %3774 }
 0xb98   :  { %1593 = vrot.lane.b32.xlu1 %v3775_v34, %s3971_s16  ;;  %v3777_v39 = vpop.eup %3776 }
 0xb99   :  { %v1751_v41 = vadd.f32 1.0, %v3777_v39  ;;  %v3779_v44 = vpop.eup %3778 }
 0xb9a   :  { %v1574_v10 = vadd.f32 1.0, %v3779_v44 }
 0xb9b   :  { %3780 = vrcp.f32 %v1751_v41 }
 0xb9c   :  { %3782 = vrcp.f32 %v1574_v10 }
 0xba5   :  { %v3781_v37 = vpop.eup %3780 }
 0xba6   :  { %v3783_v49 = vpop.eup %3782 }
 0xc04   :  { %v1771_v43 = vpop.permute.xlu0 %1770 }
 0xc05   :  { %v1773_v48 = vmul.f32 %v3781_v37, %v1771_v43 }
 0xc07   :  { %3182 = vmatmul.mubr.msk.f32.vlgmr.msra.gmra.mrb[8].mxu1 %vm86_vm0, %v1773_v48 }
 0xc08   :  { %2031 = vmatpush1.msra.mxu1 %v4113_v27  ;;  %2094 = vmatprep.mubr.f32.mxu1 %v3970_v0  ;;  %v4443_v27 = vld [vmem:[#allocation6 + $0x8] sm:$0xff] }
 0xc09   :  { %3495 = vmatprep.subr.bf16.mxu1 %v4141_v42 }
 0xc0a   :  { %v1594_v30 = vpop.permute.xlu1 %1593 }
 0xc0b   :  { %v1596_v36 = vmul.f32 %v3783_v49, %v1594_v30 }
 0xc0d   :  { %3177 = vmatmul.mubr.msk.f32.vlgmr.msra.gmra.mrb[12].mxu0 %vm86_vm0, %v1596_v36 }
 0xc0e   :  { %3465 = vmatpush1.bf16.msra.mxu0 %v4167_v11  ;;  %1915 = vmatprep.mubr.f32.mxu0 %v3970_v0 }
 0xc0f   :  { %3467 = vmatprep.subr.bf16.mxu0 %v4170_v12  ;;  %3183 = vmatmul.mubr.msk.f32.vlgmr.msra.gmra.mrb[8].mxu1 %vm190_vm1, %v3181_v51 }
 0xc10   :  { %3497 = vmatpush1.bf16.msra.mxu1 %v4143_v46  ;;  %2198 = vmatprep.mubr.f32.mxu1 %v3970_v0 }
 0xc11   :  { %3499 = vmatprep.subr.bf16.mxu1 %v4145_v47 }
 0xc12   :  { %3469 = vmatpush1.bf16.msra.mxu0 %v4174_v19 }
 0xc13   :  { %3471 = vmatprep.subr.bf16.mxu0 %v4178_v22 }
 0xc14   :  { %3501 = vmatpush1.bf16.msra.mxu1 %v4149_v52 }
 0xc15   :  { %3503 = vmatprep.subr.bf16.mxu1 %v4152_v53 }
 0xc16   :  { %3473 = vmatpush1.bf16.msra.mxu0 %v4181_v31 }
 0xc17   :  { %3475 = vmatprep.subr.bf16.mxu0 %v4184_v32 }
 0xc18   :  { %3505 = vmatpush1.bf16.msra.mxu1 %v4155_v58 }
 0xc19   :  { %3507 = vmatprep.subr.bf16.mxu1 %v4158_v59 }
 0xc1a   :  { %3477 = vmatpush1.bf16.msra.mxu0 %v4187_v35 }
 0xc1b   :  { %3527 = vmatprep.subr.bf16.mxu0 %v4086_v4 }
 0xc1c   :  { %3509 = vmatpush1.bf16.msra.mxu1 %v4161_v1 }
 0xc1d   :  { %3178 = vmatmul.mubr.msk.f32.vlgmr.msra.gmra.mrb[12].mxu0 %vm86_vm0, %v1773_v48  ;;  %3511 = vmatprep.subr.bf16.mxu1 %v4164_v2 }
 0xc1e   :  { %3529 = vmatpush1.bf16.msra.mxu0 %v4088_v8  ;;  %2377 = vmatprep.mubr.f32.mxu0 %v3970_v0 }
 0xc1f   :  { %3531 = vmatprep.subr.bf16.mxu0 %v4090_v9 }
 0xc22   :  { %3533 = vmatpush1.bf16.msra.mxu0 %v4094_v14 }
 0xc23   :  { %3535 = vmatprep.subr.bf16.mxu0 %v4097_v15 }
 0xc26   :  { %3537 = vmatpush1.bf16.msra.mxu0 %v4100_v20 }
 0xc27   :  { %3539 = vmatprep.subr.bf16.mxu0 %v4103_v21 }
 0xc2a   :  { %3541 = vmatpush1.bf16.msra.mxu0 %v4106_v24 }
 0xc2b   :  { %2387 = vmatprep.subr.mxu0 %v4443_v27 }
 0xce2   :  { %v2096_v54 = vpop.f32.mrb[8].mxu1 }
 0xce3   :  { %v2098_v57 = vpop.f32.mrb[9].mxu1  ;;  %v3184_v50 = vmul.f32 -1.442695, %v2096_v54 }
 0xce4   :  { %3784 = vtanh.f32 %v2098_v57  ;;  %v3185_v43 = vmul.f32 -1.442695, %v2098_v57  ;;  %v3190_v57 = vld [vmem:[%s4611_s0 + $0x30] sm:$0xff] }
 0xcee   :  { %v3785_v61 = vpop.eup %3784 }
 0xcef   :  { %2116 = vrot.lane.b32.xlu0 %v3785_v61, %s3971_s16  ;;  %v4463_v61 = vld [vmem:[#allocation6] sm:$0xff] }
 0xcf0   :  { %v1917_v62 = vpop.f32.mrb[12].mxu0 }
 0xcf1   :  { %v1919_v3 = vpop.f32.mrb[13].mxu0  ;;  %v1922_v63 = vadd.f32 %v1917_v62, %v4228_v56 }
 0xcf2   :  { %v1923_v25 = vadd.f32 %v1919_v3, %v4230_v60 }
 0xcf3   :  { %v3179_v7 = vmul.f32 -1.442695, %v1922_v63 }
 0xcf4   :  { %3786 = vtanh.f32 %v1923_v25  ;;  %v3180_v48 = vmul.f32 -1.442695, %v1923_v25 }
 0xcf5   :  { %3788 = vpow2.f32 %v3184_v50 }
 0xcf6   :  { %3790 = vpow2.f32 %v3179_v7 }
 0xcfe   :  { %v3787_v6 = vpop.eup %3786 }
 0xcff   :  { %1939 = vrot.lane.b32.xlu1 %v3787_v6, %s3971_s16  ;;  %v3789_v5 = vpop.eup %3788 }
 0xd00   :  { %v2107_v45 = vadd.f32 1.0, %v3789_v5  ;;  %v3791_v13 = vpop.eup %3790 }
 0xd01   :  { %v1930_v23 = vadd.f32 1.0, %v3791_v13 }
 0xd02   :  { %3792 = vrcp.f32 %v2107_v45 }
 0xd03   :  { %3794 = vrcp.f32 %v1930_v23 }
 0xd0c   :  { %v3793_v17 = vpop.eup %3792 }
 0xd0d   :  { %v3795_v28 = vpop.eup %3794  ;;  %v2114_v34 = vmul.f32 %v3793_v17, %v4398_v40 }
 0xd0e   :  { %v1937_v41 = vmul.f32 %v3795_v28, %v4402_v33 }
 0xd61   :  { %v2117_v26 = vpop.permute.xlu0 %2116 }
 0xd62   :  { %v2119_v16 = vmul.f32 %v3793_v17, %v2117_v26 }
 0xd64   :  { %2121 = vrot.lane.b32.xlu0 %v2119_v16, %s3971_s16 }
 0xd71   :  { %v1940_v29 = vpop.permute.xlu1 %1939 }
 0xd72   :  { %v1942_v55 = vmul.f32 %v3795_v28, %v1940_v29 }
 0xd74   :  { %1944 = vrot.lane.b32.xlu1 %v1942_v55, %s3971_s16 }
 0xdd6   :  { %v2122_v38 = vpop.permute.xlu0 %2121 }
 0xdd7   :  { %v4453_v18 = vadd.f32 %v2122_v38, %v2114_v34 }
 0xdd9   :  { %3796 = vtanh.f32 %v4453_v18 }
 0xde3   :  { %v3797_v39 = vpop.eup %3796 }
 0xde4   :  { %2127 = vrot.lane.b32.xlu0 %v3797_v39, %s3971_s16 }
 0xde6   :  { %v1945_v44 = vpop.permute.xlu1 %1944 }
 0xde7   :  { %v4458_v10 = vadd.f32 %v1945_v44, %v1937_v41 }
 0xde9   :  { %3798 = vtanh.f32 %v4458_v10 }
 0xdea   :  { %3800 = vpow2.f32 %v3185_v43 }
 0xdeb   :  { %3802 = vpow2.f32 %v3180_v48 }
 0xdf3   :  { %v3799_v37 = vpop.eup %3798 }
 0xdf4   :  { %1950 = vrot.lane.b32.xlu1 %v3799_v37, %s3971_s16  ;;  %v3801_v40 = vpop.eup %3800 }
 0xdf5   :  { %v2108_v49 = vadd.f32 1.0, %v3801_v40  ;;  %v3803_v30 = vpop.eup %3802 }
 0xdf6   :  { %v1931_v33 = vadd.f32 1.0, %v3803_v30 }
 0xdf7   :  { %3804 = vrcp.f32 %v2108_v49 }
 0xdf8   :  { %3806 = vrcp.f32 %v1931_v33 }
 0xe01   :  { %v3805_v36 = vpop.eup %3804 }
 0xe02   :  { %v3807_v62 = vpop.eup %3806 }
 0xe56   :  { %v2128_v51 = vpop.permute.xlu0 %2127 }
 0xe57   :  { %v2130_v54 = vmul.f32 %v3805_v36, %v2128_v51 }
 0xe59   :  { %3191 = vmatmul.mubr.msk.f32.vlgmr.msra.gmra.mrb[14].mxu0 %vm86_vm0, %v2130_v54 }
 0xe5a   :  { %2388 = vmatpush1.msra.mxu0 %v4463_v61  ;;  %2451 = vmatprep.mubr.f32.mxu0 %v3970_v0 }
 0xe5b   :  { %3543 = vmatprep.subr.bf16.mxu0 %v4141_v42 }
 0xe61   :  { %3192 = vmatmul.mubr.msk.f32.vlgmr.msra.gmra.mrb[14].mxu0 %vm190_vm1, %v3190_v57 }
 0xe62   :  { %3545 = vmatpush1.bf16.msra.mxu0 %v4143_v46  ;;  %2555 = vmatprep.mubr.f32.mxu0 %v3970_v0 }
 0xe63   :  { %3547 = vmatprep.subr.bf16.mxu0 %v4145_v47 }
 0xe66   :  { %v1951_v3 = vpop.permute.xlu1 %1950  ;;  %3549 = vmatpush1.bf16.msra.mxu0 %v4149_v52 }
 0xe67   :  { %v1953_v25 = vmul.f32 %v3807_v62, %v1951_v3  ;;  %3551 = vmatprep.subr.bf16.mxu0 %v4152_v53 }
 0xe69   :  { %3186 = vmatmul.mubr.msk.f32.vlgmr.msra.gmra.mrb[10].mxu1 %vm86_vm0, %v1953_v25 }
 0xe6a   :  { %3513 = vmatpush1.bf16.msra.mxu1 %v4167_v11  ;;  %2272 = vmatprep.mubr.f32.mxu1 %v3970_v0 }
 0xe6b   :  { %3515 = vmatprep.subr.bf16.mxu1 %v4170_v12  ;;  %3553 = vmatpush1.bf16.msra.mxu0 %v4155_v58 }
 0xe6c   :  { %3555 = vmatprep.subr.bf16.mxu0 %v4158_v59 }
 0xe6e   :  { %3517 = vmatpush1.bf16.msra.mxu1 %v4174_v19 }
 0xe6f   :  { %3519 = vmatprep.subr.bf16.mxu1 %v4178_v22  ;;  %3557 = vmatpush1.bf16.msra.mxu0 %v4161_v1 }
 0xe70   :  { %3559 = vmatprep.subr.bf16.mxu0 %v4164_v2 }
 0xe72   :  { %3521 = vmatpush1.bf16.msra.mxu1 %v4181_v31 }
 0xe73   :  { %3523 = vmatprep.subr.bf16.mxu1 %v4184_v32 }
 0xe76   :  { %3525 = vmatpush1.bf16.msra.mxu1 %v4187_v35 }
 0xe77   :  { %3575 = vmatprep.subr.bf16.mxu1 %v4086_v4 }
 0xe79   :  { %3187 = vmatmul.mubr.msk.f32.vlgmr.msra.gmra.mrb[10].mxu1 %vm86_vm0, %v2130_v54 }
 0xe7a   :  { %3577 = vmatpush1.bf16.msra.mxu1 %v4088_v8  ;;  %2734 = vmatprep.mubr.f32.mxu1 %v3970_v0 }
 0xe7b   :  { %3579 = vmatprep.subr.bf16.mxu1 %v4090_v9 }
 0xe7e   :  { %3581 = vmatpush1.bf16.msra.mxu1 %v4094_v14 }
 0xe7f   :  { %3583 = vmatprep.subr.bf16.mxu1 %v4097_v15 }
 0xe82   :  { %3585 = vmatpush1.bf16.msra.mxu1 %v4100_v20 }
 0xe83   :  { %3587 = vmatprep.subr.bf16.mxu1 %v4103_v21 }
 0xe86   :  { %3589 = vmatpush1.bf16.msra.mxu1 %v4106_v24 }
 0xe87   :  { %2744 = vmatprep.subr.mxu1 %v4443_v27 }
 0xf34   :  { %v2453_v4 = vpop.f32.mrb[14].mxu0 }
 0xf35   :  { %v2455_v6 = vpop.f32.mrb[15].mxu0  ;;  %v3193_v20 = vmul.f32 -1.442695, %v2453_v4 }
 0xf36   :  { %3808 = vtanh.f32 %v2455_v6  ;;  %v3194_v37 = vmul.f32 -1.442695, %v2455_v6 }
 0xf40   :  { %v3809_v8 = vpop.eup %3808 }
 0xf41   :  { %2473 = vrot.lane.b32.xlu0 %v3809_v8, %s3971_s16 }
 0xf4c   :  { %v2274_v50 = vpop.f32.mrb[10].mxu1 }
 0xf4d   :  { %v2276_v9 = vpop.f32.mrb[11].mxu1  ;;  %v2279_v27 = vadd.f32 %v2274_v50, %v4228_v56 }
 0xf4e   :  { %v2280_v14 = vadd.f32 %v2276_v9, %v4230_v60 }
 0xf4f   :  { %v3188_v63 = vmul.f32 -1.442695, %v2279_v27 }
 0xf50   :  { %3810 = vtanh.f32 %v2280_v14  ;;  %v3189_v40 = vmul.f32 -1.442695, %v2280_v14 }
 0xf51   :  { %3812 = vpow2.f32 %v3193_v20 }
 0xf5a   :  { %v3811_v15 = vpop.eup %3810 }
 0xf5b   :  { %2296 = vrot.lane.b32.xlu1 %v3811_v15, %s3971_s16  ;;  %v3813_v21 = vpop.eup %3812 }
 0xf5c   :  { %v2464_v24 = vadd.f32 1.0, %v3813_v21 }
 0xf5e   :  { %3814 = vrcp.f32 %v2464_v24 }
 0xf5f   :  { %3816 = vpow2.f32 %v3188_v63 }
 0xf68   :  { %v3815_v5 = vpop.eup %3814 }
 0xf69   :  { %v3817_v13 = vpop.eup %3816  ;;  %v2471_v28 = vmul.f32 %v3815_v5, %v4453_v18 }
 0xf6a   :  { %v2287_v17 = vadd.f32 1.0, %v3817_v13 }
 0xf6c   :  { %3818 = vrcp.f32 %v2287_v17 }
 0xf76   :  { %v3819_v26 = vpop.eup %3818 }
 0xf77   :  { %v2294_v38 = vmul.f32 %v3819_v26, %v4458_v10  ;;  %v3199_v10 = vld [vmem:[%s4611_s0 + $0x38] sm:$0xff] }
 0xfb3   :  { %v2474_v7 = vpop.permute.xlu0 %2473 }
 0xfb4   :  { %v2476_v45 = vmul.f32 %v3815_v5, %v2474_v7 }
 0xfb6   :  { %2478 = vrot.lane.b32.xlu0 %v2476_v45, %s3971_s16 }
 0xfcd   :  { %v2297_v16 = vpop.permute.xlu1 %2296 }
 0xfce   :  { %v2299_v23 = vmul.f32 %v3819_v26, %v2297_v16 }
 0xfd0   :  { %2301 = vrot.lane.b32.xlu1 %v2299_v23, %s3971_s16 }
0x1028   :  { %v2479_v29 = vpop.permute.xlu0 %2478 }
0x1029   :  { %v4508_v55 = vadd.f32 %v2479_v29, %v2471_v28 }
0x102b   :  { %3820 = vtanh.f32 %v4508_v55 }
0x1035   :  { %v3821_v34 = vpop.eup %3820 }
0x1036   :  { %2484 = vrot.lane.b32.xlu0 %v3821_v34, %s3971_s16 }
0x1042   :  { %v2302_v39 = vpop.permute.xlu1 %2301 }
0x1043   :  { %v4513_v41 = vadd.f32 %v2302_v39, %v2294_v38 }
0x1045   :  { %3822 = vtanh.f32 %v4513_v41 }
0x1046   :  { %3824 = vpow2.f32 %v3194_v37 }
0x104f   :  { %v3823_v44 = vpop.eup %3822 }
0x1050   :  { %2307 = vrot.lane.b32.xlu1 %v3823_v44, %s3971_s16  ;;  %v3825_v18 = vpop.eup %3824 }
0x1051   :  { %v2465_v43 = vadd.f32 1.0, %v3825_v18 }
0x1053   :  { %3826 = vrcp.f32 %v2465_v43 }
0x1054   :  { %3828 = vpow2.f32 %v3189_v40  ;;  %v3042_v40 = vld [vmem:[%s4617_s6 + $0x10] sm:$0xff] }
0x105d   :  { %v3827_v48 = vpop.eup %3826 }
0x105e   :  { %v3829_v36 = vpop.eup %3828 }
0x105f   :  { %v2288_v51 = vadd.f32 1.0, %v3829_v36  ;;  %v3044_v36 = vld [vmem:[%s4617_s6 + $0x20] sm:$0xff] }
0x1061   :  { %3830 = vrcp.f32 %v2288_v51  ;;  %v3045_v51 = vld [vmem:[%s4617_s6 + $0x28] sm:$0xff] }
0x10a8   :  { %v2485_v49 = vpop.permute.xlu0 %2484 }
0x10a9   :  { %v2487_v30 = vmul.f32 %v3827_v48, %v2485_v49  ;;  %v3972_v48 = vmov 0.0|0.0  }
0x10ab   :  { %3200 = vmatmul.mubr.msk.f32.vlgmr.msra.gmra.mrb[12].mxu1 %vm86_vm0, %v2487_v30 }
0x10ac   :  { %2745 = vmatpush1.msra.mxu1 %v4463_v61  ;;  %2808 = vmatprep.mubr.f32.mxu1 %v3970_v0 }
0x10ad   :  { %3591 = vmatprep.subr.bf16.mxu1 %v4141_v42  ;;  %v3831_v42 = vpop.eup %3830 }
0x10b3   :  { %3201 = vmatmul.mubr.msk.f32.vlgmr.msra.gmra.mrb[12].mxu1 %vm190_vm1, %v3199_v10 }
0x10b4   :  { %3593 = vmatpush1.bf16.msra.mxu1 %v4143_v46  ;;  %2912 = vmatprep.mubr.f32.mxu1 %v3970_v0 }
0x10b5   :  { %3595 = vmatprep.subr.bf16.mxu1 %v4145_v47 }
0x10b8   :  { %3597 = vmatpush1.bf16.msra.mxu1 %v4149_v52 }
0x10b9   :  { %3599 = vmatprep.subr.bf16.mxu1 %v4152_v53 }
0x10bc   :  { %3601 = vmatpush1.bf16.msra.mxu1 %v4155_v58 }
0x10bd   :  { %3603 = vmatprep.subr.bf16.mxu1 %v4158_v59 }
0x10c0   :  { %3605 = vmatpush1.bf16.msra.mxu1 %v4161_v1 }
0x10c1   :  { %3607 = vmatprep.subr.bf16.mxu1 %v4164_v2 }
0x10c2   :  { %v2308_v54 = vpop.permute.xlu1 %2307 }
0x10c3   :  { %v2310_v46 = vmul.f32 %v3831_v42, %v2308_v54  ;;  %v3629_v42 = vpack.c.bf16 %v3045_v51, %v3044_v36  ;;  %v3046_v54 = vld [vmem:[%s4617_s6 + $0x30] sm:$0xff] }
0x10c5   :  { %3195 = vmatmul.mubr.msk.f32.vlgmr.msra.gmra.mrb[16].mxu0 %vm86_vm0, %v2310_v46  ;;  %v3047_v46 = vld [vmem:[%s4617_s6 + $0x38] sm:$0xff] }
0x10c6   :  { %3561 = vmatpush1.bf16.msra.mxu0 %v4167_v11  ;;  %2629 = vmatprep.mubr.f32.mxu0 %v3970_v0 }
0x10c7   :  { %3563 = vmatprep.subr.bf16.mxu0 %v4170_v12 }
0x10ca   :  { %3565 = vmatpush1.bf16.msra.mxu0 %v4174_v19 }
0x10cb   :  { %3567 = vmatprep.subr.bf16.mxu0 %v4178_v22 }
0x10ce   :  { %3569 = vmatpush1.bf16.msra.mxu0 %v4181_v31 }
0x10cf   :  { %3571 = vmatprep.subr.bf16.mxu0 %v4184_v32 }
0x10d2   :  { %3573 = vmatpush1.bf16.msra.mxu0 %v4187_v35 }
0x10d3   :  { %3622 = vmatprep.subr.bf16.mxu0 %v3972_v48 }
0x10d5   :  { %3196 = vmatmul.mubr.msk.f32.vlgmr.msra.gmra.mrb[16].mxu0 %vm86_vm0, %v2487_v30  ;;  %v3043_v30 = vld [vmem:[%s4617_s6 + $0x18] sm:$0xff] }
0x10d6   :  { %v3626_v10 = vpack.c.bf16 %v3043_v30, %v3042_v40  ;;  %3235 = vmatprep.mubr.msk.f32.mxu0 %vm3973_vm2, %v3970_v0 }
0x1186   :  { %v2810_v47 = vpop.f32.mrb[12].mxu1 }
0x1187   :  { %v2812_v52 = vpop.f32.mrb[13].mxu1  ;;  %v3202_v33 = vmul.f32 -1.442695, %v2810_v47  ;;  %v3632_v47 = vpack.c.bf16 %v3047_v46, %v3046_v54 }
0x1188   :  { %3832 = vtanh.f32 %v2812_v52  ;;  %v3203_v13 = vmul.f32 -1.442695, %v2812_v52 }
0x1192   :  { %v3833_v53 = vpop.eup %3832 }
0x1193   :  { %2830 = vrot.lane.b32.xlu0 %v3833_v53, %s3971_s16 }
0x11a8   :  { %v2631_v58 = vpop.f32.mrb[16].mxu0 }
0x11a9   :  { %v2633_v59 = vpop.f32.mrb[17].mxu0  ;;  %v2636_v25 = vadd.f32 %v2631_v58, %v4228_v56 }
0x11aa   :  { %v2637_v1 = vadd.f32 %v2633_v59, %v4230_v60 }
0x11ab   :  { %v3197_v6 = vmul.f32 -1.442695, %v2636_v25  ;;  %v3208_v25 = vld [vmem:[%s4618_s7] ss:$0 sm:$0xff] }
0x11ac   :  { %3834 = vtanh.f32 %v2637_v1  ;;  %v3198_v29 = vmul.f32 -1.442695, %v2637_v1 }
0x11ad   :  { %3836 = vpow2.f32 %v3202_v33 }
0x11b6   :  { %v3835_v2 = vpop.eup %3834 }
0x11b7   :  { %2653 = vrot.lane.b32.xlu1 %v3835_v2, %s3971_s16  ;;  %v3837_v61 = vpop.eup %3836 }
0x11b8   :  { %v2821_v57 = vadd.f32 1.0, %v3837_v61 }
0x11ba   :  { %3838 = vrcp.f32 %v2821_v57 }
0x11bb   :  { %3840 = vpow2.f32 %v3197_v6 }
0x11c4   :  { %v3839_v62 = vpop.eup %3838 }
0x11c5   :  { %v3841_v8 = vpop.eup %3840  ;;  %v2828_v20 = vmul.f32 %v3839_v62, %v4508_v55 }
0x11c6   :  { %v2644_v50 = vadd.f32 1.0, %v3841_v8 }
0x11c8   :  { %3842 = vrcp.f32 %v2644_v50 }
0x11d2   :  { %v3843_v9 = vpop.eup %3842 }
0x11d3   :  { %v2651_v63 = vmul.f32 %v3843_v9, %v4513_v41 }
0x1205   :  { %v2831_v3 = vpop.permute.xlu0 %2830 }
0x1206   :  { %v2833_v4 = vmul.f32 %v3839_v62, %v2831_v3 }
0x1208   :  { %2835 = vrot.lane.b32.xlu0 %v2833_v4, %s3971_s16 }
0x1229   :  { %v2654_v14 = vpop.permute.xlu1 %2653 }
0x122a   :  { %v2656_v15 = vmul.f32 %v3843_v9, %v2654_v14 }
0x122c   :  { %2658 = vrot.lane.b32.xlu1 %v2656_v15, %s3971_s16 }
0x127a   :  { %v2836_v21 = vpop.permute.xlu0 %2835 }
0x127b   :  { %v2838_v24 = vadd.f32 %v2836_v21, %v2828_v20 }
0x127d   :  { %3844 = vtanh.f32 %v2838_v24 }
0x1287   :  { %v3845_v27 = vpop.eup %3844 }
0x1288   :  { %2841 = vrot.lane.b32.xlu0 %v3845_v27, %s3971_s16 }
0x129e   :  { %v2659_v5 = vpop.permute.xlu1 %2658 }
0x129f   :  { %v4553_v7 = vadd.f32 %v2659_v5, %v2651_v63 }
0x12a1   :  { %3846 = vtanh.f32 %v4553_v7 }
0x12a2   :  { %3848 = vpow2.f32 %v3203_v13 }
0x12ab   :  { %v3847_v45 = vpop.eup %3846 }
0x12ac   :  { %2664 = vrot.lane.b32.xlu1 %v3847_v45, %s3971_s16  ;;  %v3849_v17 = vpop.eup %3848 }
0x12ad   :  { %v2822_v26 = vadd.f32 1.0, %v3849_v17 }
0x12af   :  { %3850 = vrcp.f32 %v2822_v26 }
0x12b0   :  { %3852 = vpow2.f32 %v3198_v29 }
0x12b9   :  { %v3851_v16 = vpop.eup %3850 }
0x12ba   :  { %v3853_v55 = vpop.eup %3852 }
0x12bb   :  { %v2645_v34 = vadd.f32 1.0, %v3853_v55 }
0x12bd   :  { %3854 = vrcp.f32 %v2645_v34 }
0x12c7   :  { %v3855_v38 = vpop.eup %3854 }
0x12fa   :  { %v2842_v23 = vpop.permute.xlu0 %2841 }
0x12fb   :  { %v2844_v28 = vmul.f32 %v3851_v16, %v2842_v23 }
0x12fd   :  { %3025 = vst.msk [vmem:[#allocation2] sm:$0xff] %vm86_vm0, %v2844_v28 }
0x131e   :  { %v2665_v39 = vpop.permute.xlu1 %2664 }
0x131f   :  { %v2667_v41 = vmul.f32 %v3855_v38, %v2665_v39 }
0x1321   :  { %3204 = vmatmul.mubr.msk.f32.vlgmr.msra.gmra.mrb[14].mxu1 %vm86_vm0, %v2667_v41 }
0x1322   :  { %3609 = vmatpush1.bf16.msra.mxu1 %v4167_v11  ;;  %2986 = vmatprep.mubr.f32.mxu1 %v3970_v0 }
0x1323   :  { %3611 = vmatprep.subr.bf16.mxu1 %v4170_v12 }
0x1326   :  { %3613 = vmatpush1.bf16.msra.mxu1 %v4174_v19 }
0x1327   :  { %3615 = vmatprep.subr.bf16.mxu1 %v4178_v22 }
0x132a   :  { %3617 = vmatpush1.bf16.msra.mxu1 %v4181_v31 }
0x132b   :  { %3619 = vmatprep.subr.bf16.mxu1 %v4184_v32 }
0x132e   :  { %3621 = vmatpush1.bf16.msra.mxu1 %v4187_v35 }
0x1331   :  { %3205 = vmatmul.mubr.msk.f32.vlgmr.msra.gmra.mrb[14].mxu1 %vm86_vm0, %v2844_v28 }
0x1404   :  { %v2988_v44 = vpop.f32.mrb[14].mxu1 }
0x1405   :  { %v2990_v37 = vpop.f32.mrb[15].mxu1  ;;  %v2993_v12 = vadd.f32 %v2988_v44, %v4228_v56  ;;  %v3041_v56 = vld [vmem:[%s4617_s6 + $0x8] sm:$0xff] }
0x1406   :  { %v2994_v11 = vadd.f32 %v2990_v37, %v4230_v60  ;;  %v3040_v60 = vld [vmem:[%s4617_s6] sm:$0xff] }
0x1407   :  { %v3206_v19 = vmul.f32 -1.442695, %v2993_v12  ;;  %v3623_v49 = vpack.c.bf16 %v3041_v56, %v3040_v60 }
0x1408   :  { %3856 = vtanh.f32 %v2994_v11  ;;  %v3207_v2 = vmul.f32 -1.442695, %v2994_v11 }
0x1409   :  { %3858 = vpow2.f32 %v3206_v19  ;;  %3624 = vmatpush3.bf16.msra.mxu0 %v3623_v49 }
0x140a   :  { %3625 = vmatprep.subr.bf16.mxu0 %v3972_v48 }
0x140d   :  { %3627 = vmatpush3.bf16.msra.mxu0 %v3626_v10 }
0x140e   :  { %3628 = vmatprep.subr.bf16.mxu0 %v3972_v48 }
0x1411   :  { %3630 = vmatpush3.bf16.msra.mxu0 %v3629_v42 }
0x1412   :  { %v3857_v18 = vpop.eup %3856  ;;  %3631 = vmatprep.subr.bf16.mxu0 %v3972_v48 }
0x1413   :  { %3010 = vrot.lane.b32.xlu1 %v3857_v18, %s3971_s16  ;;  %v3859_v22 = vpop.eup %3858 }
0x1414   :  { %v3001_v31 = vadd.f32 1.0, %v3859_v22 }
0x1415   :  { %3633 = vmatpush3.bf16.msra.mxu0 %v3632_v47 }
0x1416   :  { %3860 = vrcp.f32 %v3001_v31 }
0x1420   :  { %v3861_v32 = vpop.eup %3860 }
0x1421   :  { %v3008_v52 = vmul.f32 %v3861_v32, %v4553_v7 }
0x1485   :  { %v3011_v43 = vpop.permute.xlu1 %3010 }
0x1486   :  { %v3013_v35 = vmul.f32 %v3861_v32, %v3011_v43 }
0x1488   :  { %3015 = vrot.lane.b32.xlu0 %v3013_v35, %s3971_s16 }
0x148c   :  { %3027 = vrot.lane.b32.xlu0 %v2838_v24, %s3971_s16 }
0x14fa   :  { %v3016_v53 = vpop.permute.xlu0 %3015 }
0x14fb   :  { %v3018_v58 = vadd.f32 %v3016_v53, %v3008_v52 }
0x14fd   :  { %3862 = vtanh.f32 %v3018_v58 }
0x14fe   :  { %v3028_v59 = vpop.permute.xlu0 %3027  ;;  %3864 = vpow2.f32 %v3207_v2 }
0x14ff   :  { %3030 = vst.msk [vmem:[#allocation3] sm:$0xff] %vm86_vm0, %v3028_v59 }
0x1507   :  { %v3863_v1 = vpop.eup %3862 }
0x1508   :  { %3021 = vrot.lane.b32.xlu1 %v3863_v1, %s3971_s16  ;;  %v3865_v33 = vpop.eup %3864 }
0x1509   :  { %v3002_v61 = vadd.f32 1.0, %v3865_v33 }
0x150b   :  { %3866 = vrcp.f32 %v3002_v61 }
0x150c   :  { %3033 = vrot.lane.b32.xlu1 %v3018_v58, %s3971_s16 }
0x1515   :  { %v3867_v57 = vpop.eup %3866 }
0x157a   :  { %v3022_v62 = vpop.permute.xlu1 %3021 }
0x157b   :  { %v3024_v3 = vmul.f32 %v3867_v57, %v3022_v62 }
0x157d   :  { %3031 = vst.msk [vmem:[#allocation4] sm:$0xff] %vm86_vm0, %v3024_v3  ;;  %3236 = vmatmul.mubr.msk.f32.vlgmr.msra.gmra.mrb[18].mxu0 %vm86_vm0, %v3024_v3 }
0x157e   :  { %v3034_v0 = vpop.permute.xlu1 %3033 }
0x157f   :  { %3036 = vst.msk [vmem:[#allocation5] sm:$0xff] %vm86_vm0, %v3034_v0 }
0x1650   :  { %v3124_v4 = vpop.f32.mrb[18].mxu0 }
0x1651   :  { %v3125_v6 = vadd.f32 %v3208_v25, %v3124_v4  ;;  %v3237_v8 = vpop.f32.mrb[19].mxu0 }
0x1653   :  { %3129 = vst.msk [vmem:[%s4619_s8] sm:$0xff] %vm3128_vm3, %v3125_v6 }
0x1654   :  { %3134 = vsyncpa [#allocation7], 1 }
0x1655   :  { %3135 = vsyncpa [#allocation9], 1 }
0x1656   :  { %3136 = vsyncpa [#allocation12], 1 }

</bundles_post_ra>
